<compile_context>
chip_gen: v6e
topology: v6e:2x2x1
jax: 0.10.0
libtpu: 0.0.40
codegen_flags: <defaults>
</compile_context>

<pallas_src>
import math

import jax
import jax.numpy as jnp
from jax.experimental import pallas as pl
from jax.experimental.pallas import tpu as pltpu

# ----------------------- small synthetic config -----------------------
VOCAB = 100
MAX_POS = 16
D_MODEL = 256                 # lane-dense (multiple of 128)
N_HEADS = 2
D_HEAD = D_MODEL // N_HEADS   # 128 -> head slices are 128-aligned
D_FFN = 512
N_LAYERS = 2
D_IN = D_MODEL + 1            # mirrors (768 + 1) in the reference module
D_OUT = 1
LN_EPS = 1e-12

_VEC_W = 3 * D_MODEL          # packed parameter-slab width (768)


# ----------------------------- kernels --------------------------------
def _layernorm_f32(x, g, b):
    mean = jnp.mean(x, axis=-1, keepdims=True)
    cen = x - mean
    var = jnp.mean(cen * cen, axis=-1, keepdims=True)
    return cen * jax.lax.rsqrt(var + LN_EPS) * g + b


def _make_layer_kernel(apply_input_ln, B, S):
    """Build one fused DistilBERT encoder-layer kernel.

    Operands: seq_lens (SMEM, scalar-prefetch), x (M=B*S, D), wqkv, wo, w1, w2
    (bf16 weights) and a packed (8, 3D) f32 slab holding every bias/LN vector.
    If apply_input_ln, the embedding LayerNorm is applied to x first (layer 0).
    """
    D = D_MODEL
    scale = 1.0 / math.sqrt(D_HEAD)

    def kernel(seq_ref, x_ref, wqkv_ref, wo_ref, w1_ref, w2_ref, vec_ref, o_ref):
        x = x_ref[...].astype(jnp.float32)                        # (M, D) f32

        # ---- packed bias / LayerNorm slab: static 128-aligned lane slices ----
        bqkv = vec_ref[0:1, :]                                    # (1, 3D)
        bo   = vec_ref[1:2, 0:D]
        ln1g = vec_ref[1:2, D:2 * D]
        ln1b = vec_ref[1:2, 2 * D:3 * D]
        b1   = vec_ref[2:3, 0:D_FFN]
        b2   = vec_ref[2:3, D_FFN:D_FFN + D]
        ln2g = vec_ref[3:4, 0:D]
        ln2b = vec_ref[3:4, D:2 * D]

        if apply_input_ln:                                        # fused embedding LN (layer 0)
            ln0g = vec_ref[3:4, 2 * D:3 * D]
            ln0b = vec_ref[4:5, 0:D]
            x = _layernorm_f32(x, ln0g, ln0b)

        # ---- fused QKV projection over the folded batch: M = B*S rows ----
        qkv = jnp.dot(x.astype(jnp.bfloat16), wqkv_ref[...],
                      preferred_element_type=jnp.float32) + bqkv  # (M, 3D) f32
        qkv_bf = qkv.astype(jnp.bfloat16)                         # single hoisted cast

        # ---- per-example attention (tiny (S,S) scores), heads 128-aligned ----
        # NOTE: q @ k^T uses a transposed-rhs contraction; at real S check the
        # Mosaic MLIR for a vxpose and pre-transpose K if it shows up (v6e XLU).
        ctx_rows = []
        for b in range(B):
            qkv_b = qkv_bf[b * S:(b + 1) * S, :]                  # (S, 3D) bf16
            col = jax.lax.broadcasted_iota(jnp.int32, (1, S), 1)
            mask_b = jnp.where(col < seq_ref[b],
                               jnp.float32(0.0), jnp.float32(-1e9))   # (1, S)
            head_ctx = []
            for h in range(N_HEADS):
                q = qkv_b[:, h * D_HEAD:(h + 1) * D_HEAD]
                k = qkv_b[:, D + h * D_HEAD: D + (h + 1) * D_HEAD]
                v = qkv_b[:, 2 * D + h * D_HEAD: 2 * D + (h + 1) * D_HEAD]

                s = jax.lax.dot_general(
                    q, k, (((1,), (1,)), ((), ())),
                    preferred_element_type=jnp.float32) * scale   # (S, S) f32
                s = s + mask_b
                s = s - jnp.max(s, axis=-1, keepdims=True)
                p = jnp.exp(s)
                p = p * pl.reciprocal(jnp.sum(p, axis=-1, keepdims=True),
                                      approx=True)
                head_ctx.append(jnp.dot(p.astype(jnp.bfloat16), v,
                                        preferred_element_type=jnp.float32))
            ctx_rows.append(jnp.concatenate(head_ctx, axis=1))    # (S, D)
        ctx = jnp.concatenate(ctx_rows, axis=0).astype(jnp.bfloat16)   # (M, D)

        # ---- single output projection over the folded batch ----
        attn = jnp.dot(ctx, wo_ref[...],
                       preferred_element_type=jnp.float32) + bo   # (M, D) f32

        # ---- residual + LayerNorm 1 (f32) ----
        h1 = _layernorm_f32(attn + x, ln1g, ln1b)

        # ---- FFN: GELU(h1 @ W1 + b1) @ W2 + b2 ----
        ff = jnp.dot(h1.astype(jnp.bfloat16), w1_ref[...],
                     preferred_element_type=jnp.float32) + b1
        # TODO(synk): HF DistilBERT uses exact erf-GELU; tanh approximation
        # kept here for robust Mosaic lowering (small systematic difference).
        ff = jax.nn.gelu(ff)
        ff = jnp.dot(ff.astype(jnp.bfloat16), w2_ref[...],
                     preferred_element_type=jnp.float32) + b2

        # ---- residual + LayerNorm 2 (f32), stored bf16 (lane-dense) ----
        o_ref[...] = _layernorm_f32(ff + h1, ln2g, ln2b).astype(o_ref.dtype)

    return kernel


# ----------------------------- wrappers --------------------------------
def encoder_layer(x2d, seq_lens, lp, *, B, S, apply_input_ln, out_dtype):
    """One fused DistilBERT encoder layer on a (B*S, D) activation slab."""
    M, D = x2d.shape
    kernel = _make_layer_kernel(apply_input_ln, B, S)

    def full(shape):
        return pl.BlockSpec(shape, lambda i, sl: (0, 0))

    flops = int(2 * M * D * (3 * D) + 2 * M * D * D + 2 * (2 * M * D * D_FFN)
                + B * N_HEADS * 2 * (2 * S * S * D_HEAD))
    transcendentals = int(B * N_HEADS * S * S + M * D_FFN)
    bytes_accessed = int(
        x2d.size * x2d.dtype.itemsize + M * D * 2       # activations in + out (bf16)
        + 2 * (lp["wqkv"].size + lp["wo"].size + lp["w1"].size + lp["w2"].size)
        + 4 * lp["vecs"].size)

    return pl.pallas_call(
        kernel,
        out_shape=jax.ShapeDtypeStruct((M, D), out_dtype),
        grid_spec=pltpu.PrefetchScalarGridSpec(
            num_scalar_prefetch=1,               # seq_lens -> SMEM
            grid=(1,),                           # single step: whole M block feeds the MXU
            in_specs=[
                full((M, D)),                    # x (B*S, D)
                full((D, 3 * D)),                # wqkv (bf16)
                full((D, D)),                    # wo (bf16)
                full((D, D_FFN)),                # w1 (bf16)
                full((D_FFN, D)),                # w2 (bf16)
                full((8, _VEC_W)),               # packed bias / LN slab (f32)
            ],
            out_specs=full((M, D)),
        ),
        compiler_params=pltpu.CompilerParams(
            dimension_semantics=("arbitrary",)),
        cost_estimate=pl.CostEstimate(flops=flops,
                                      transcendentals=transcendentals,
                                      bytes_accessed=bytes_accessed),
    )(seq_lens, x2d, lp["wqkv"], lp["wo"], lp["w1"], lp["w2"], lp["vecs"])


# ---------------------- parameter initialization ----------------------
def _pack_vecs(bqkv, bo, ln1_g, ln1_b, b1, b2, ln2_g, ln2_b,
               ln0_g=None, ln0_b=None):
    """Pack all per-layer bias/LN vectors into one (8, 3*D) f32 slab."""
    D = D_MODEL
    slab = jnp.zeros((8, _VEC_W), jnp.float32)
    slab = slab.at[0, :].set(bqkv)
    slab = slab.at[1, 0:D].set(bo)
    slab = slab.at[1, D:2 * D].set(ln1_g)
    slab = slab.at[1, 2 * D:3 * D].set(ln1_b)
    slab = slab.at[2, 0:D_FFN].set(b1)
    slab = slab.at[2, D_FFN:D_FFN + D].set(b2)
    slab = slab.at[3, 0:D].set(ln2_g)
    slab = slab.at[3, D:2 * D].set(ln2_b)
    if ln0_g is not None:                       # embedding LN, fused into layer 0
        slab = slab.at[3, 2 * D:3 * D].set(ln0_g)
        slab = slab.at[4, 0:D].set(ln0_b)
    return slab


def init_params(key):
    keys = iter(jax.random.split(key, 16))

    def nrm(shape, dtype=jnp.float32, scale=0.02):
        return (scale * jax.random.normal(next(keys), shape)).astype(dtype)

    params = {
        "word_emb": nrm((VOCAB, D_MODEL)),
        "pos_emb": nrm((MAX_POS, D_MODEL)),
        "reg_w": nrm((D_IN, D_OUT)),
        "reg_b": jnp.zeros((1, D_OUT), jnp.float32),
        "layers": [],
    }
    emb_ln_g = jnp.ones((D_MODEL,), jnp.float32)
    emb_ln_b = jnp.zeros((D_MODEL,), jnp.float32)
    for li in range(N_LAYERS):
        vecs = _pack_vecs(
            bqkv=jnp.zeros((3 * D_MODEL,), jnp.float32),
            bo=jnp.zeros((D_MODEL,), jnp.float32),
            ln1_g=jnp.ones((D_MODEL,), jnp.float32),
            ln1_b=jnp.zeros((D_MODEL,), jnp.float32),
            b1=jnp.zeros((D_FFN,), jnp.float32),
            b2=jnp.zeros((D_MODEL,), jnp.float32),
            ln2_g=jnp.ones((D_MODEL,), jnp.float32),
            ln2_b=jnp.zeros((D_MODEL,), jnp.float32),
            ln0_g=emb_ln_g if li == 0 else None,
            ln0_b=emb_ln_b if li == 0 else None)
        params["layers"].append({
            "wqkv": nrm((D_MODEL, 3 * D_MODEL), jnp.bfloat16),   # fused Q|K|V
            "wo": nrm((D_MODEL, D_MODEL), jnp.bfloat16),
            "w1": nrm((D_MODEL, D_FFN), jnp.bfloat16),
            "w2": nrm((D_FFN, D_MODEL), jnp.bfloat16),
            "vecs": vecs,                                        # packed slab
        })
    return params


# ----------------------------- forward --------------------------------
def distilbert_regressor(params, input_ids, attention_masks, spends):
    B, S = input_ids.shape

    # Embeddings: gathers are plain-JAX glue; LN is fused into layer 0's kernel.
    word = params["word_emb"][input_ids]                         # (B, S, D)
    pos = params["pos_emb"][jnp.arange(S)][None, :, :]           # (1, S, D)
    h = (word + pos).astype(jnp.float32).reshape(B * S, D_MODEL)

    # Per-example valid lengths delivered via SMEM scalar prefetch; the -1e9
    # additive mask is built in-kernel with iota (no lane-sparse mask DMA).
    # TODO(synk): assumes contiguous prefix padding masks (standard tokenizer
    # padding); arbitrary 0/1 masks would need the full mask passed in.
    seq_lens = jnp.sum(attention_masks.astype(jnp.int32), axis=1).astype(jnp.int32)

    # One fused pallas_call per encoder layer; inter-layer activations bf16.
    for li, lp in enumerate(params["layers"]):
        h = encoder_layer(h, seq_lens, lp, B=B, S=S,
                          apply_input_ln=(li == 0),
                          out_dtype=jnp.bfloat16)

    h = h.reshape(B, S, D_MODEL)
    pooled_output = h[:, 0].astype(jnp.float32)                  # [CLS] token
    combined_input = jnp.concatenate(
        [pooled_output, spends.astype(jnp.float32)], axis=1)     # (B, D+1)

    # nn.Dropout(drop_rate) is identity at inference; the Linear(D+1, 1) head
    # is plain XLA (lane-sparse N=1 Pallas matmul is pure overhead).
    return combined_input @ params["reg_w"] + params["reg_b"]    # (B, 1) f32


# ------------------------------- main ----------------------------------
if __name__ == "__main__":
    key = jax.random.PRNGKey(0)
    k_param, k_ids, k_spend = jax.random.split(key, 3)

    B, S = 2, 8
    params = init_params(k_param)

    input_ids = jax.random.randint(k_ids, (B, S), 0, VOCAB, dtype=jnp.int32)
    attention_masks = jnp.array(
        [[1, 1, 1, 1, 1, 1, 1, 1],
         [1, 1, 1, 1, 1, 0, 0, 0]], dtype=jnp.float32)           # padded example
    spends = jax.random.normal(k_spend, (B, 1), dtype=jnp.float32)

    out = distilbert_regressor(params, input_ids, attention_masks, spends)
    out = jax.block_until_ready(out)
    assert out.shape == (B, 1) and out.dtype == jnp.float32
    assert bool(jnp.all(jnp.isfinite(out)))
    print("KERNEL_OK")
</pallas_src>

<mosaic_0001>
module attributes {stable_mosaic.version = 11 : i64} {
  func.func @kernel(%arg0: i32, %arg1: memref<2xi32, #tpu.memory_space<smem>>, %arg2: memref<16x256xf32, #tpu.memory_space<vmem>>, %arg3: memref<256x768xbf16, #tpu.memory_space<vmem>>, %arg4: memref<256x256xbf16, #tpu.memory_space<vmem>>, %arg5: memref<256x512xbf16, #tpu.memory_space<vmem>>, %arg6: memref<512x256xbf16, #tpu.memory_space<vmem>>, %arg7: memref<8x768xf32, #tpu.memory_space<vmem>>, %arg8: memref<16x256xbf16, #tpu.memory_space<vmem>>) attributes {dimension_semantics = [#tpu.dimension_semantics<arbitrary>], iteration_bounds = array<i64: 1>, scalar_prefetch = 1 : i64, scratch_operands = 0 : i64, tpu.core_type = #tpu.core_type<tc>, window_params = [{pipeline_mode = #tpu.pipeline_mode<synchronous>, transform_indices = @transform_0, window_bounds = array<i64: 16, 256>}, {pipeline_mode = #tpu.pipeline_mode<synchronous>, transform_indices = @transform_1, window_bounds = array<i64: 256, 768>}, {pipeline_mode = #tpu.pipeline_mode<synchronous>, transform_indices = @transform_2, window_bounds = array<i64: 256, 256>}, {pipeline_mode = #tpu.pipeline_mode<synchronous>, transform_indices = @transform_3, window_bounds = array<i64: 256, 512>}, {pipeline_mode = #tpu.pipeline_mode<synchronous>, transform_indices = @transform_4, window_bounds = array<i64: 512, 256>}, {pipeline_mode = #tpu.pipeline_mode<synchronous>, transform_indices = @transform_5, window_bounds = array<i64: 8, 768>}, {pipeline_mode = #tpu.pipeline_mode<synchronous>, transform_indices = @transform_6, window_bounds = array<i64: 16, 256>}]} {
    %c0 = arith.constant 0 : index
    %c0_0 = arith.constant 0 : index
    %0 = vector.load %arg2[%c0, %c0_0] : memref<16x256xf32, #tpu.memory_space<vmem>>, vector<16x256xf32>
    %c0_1 = arith.constant 0 : index
    %c0_2 = arith.constant 0 : index
    %1 = vector.load %arg7[%c0_1, %c0_2] : memref<8x768xf32, #tpu.memory_space<vmem>>, vector<1x768xf32>
    %c1 = arith.constant 1 : index
    %c0_3 = arith.constant 0 : index
    %2 = vector.load %arg7[%c1, %c0_3] : memref<8x768xf32, #tpu.memory_space<vmem>>, vector<1x256xf32>
    %c1_4 = arith.constant 1 : index
    %c256 = arith.constant 256 : index
    %3 = vector.load %arg7[%c1_4, %c256] : memref<8x768xf32, #tpu.memory_space<vmem>>, vector<1x256xf32>
    %c1_5 = arith.constant 1 : index
    %c512 = arith.constant 512 : index
    %4 = vector.load %arg7[%c1_5, %c512] : memref<8x768xf32, #tpu.memory_space<vmem>>, vector<1x256xf32>
    %c2 = arith.constant 2 : index
    %c0_6 = arith.constant 0 : index
    %5 = vector.load %arg7[%c2, %c0_6] : memref<8x768xf32, #tpu.memory_space<vmem>>, vector<1x512xf32>
    %c2_7 = arith.constant 2 : index
    %c512_8 = arith.constant 512 : index
    %6 = vector.load %arg7[%c2_7, %c512_8] : memref<8x768xf32, #tpu.memory_space<vmem>>, vector<1x256xf32>
    %c3 = arith.constant 3 : index
    %c0_9 = arith.constant 0 : index
    %7 = vector.load %arg7[%c3, %c0_9] : memref<8x768xf32, #tpu.memory_space<vmem>>, vector<1x256xf32>
    %c3_10 = arith.constant 3 : index
    %c256_11 = arith.constant 256 : index
    %8 = vector.load %arg7[%c3_10, %c256_11] : memref<8x768xf32, #tpu.memory_space<vmem>>, vector<1x256xf32>
    %c3_12 = arith.constant 3 : index
    %c512_13 = arith.constant 512 : index
    %9 = vector.load %arg7[%c3_12, %c512_13] : memref<8x768xf32, #tpu.memory_space<vmem>>, vector<1x256xf32>
    %c4 = arith.constant 4 : index
    %c0_14 = arith.constant 0 : index
    %10 = vector.load %arg7[%c4, %c0_14] : memref<8x768xf32, #tpu.memory_space<vmem>>, vector<1x256xf32>
    %cst = arith.constant dense<0.000000e+00> : vector<16xf32>
    %11 = vector.multi_reduction <add>, %0, %cst [1] : vector<16x256xf32> to vector<16xf32>
    %12 = vector.shape_cast %11 : vector<16xf32> to vector<16x1xf32>
    %cst_15 = arith.constant 2.560000e+02 : f32
    %13 = vector.broadcast %cst_15 : f32 to vector<16x1xf32>
    %14 = arith.divf %12, %13 : vector<16x1xf32>
    %15 = vector.broadcast %14 : vector<16x1xf32> to vector<16x256xf32>
    %16 = arith.subf %0, %15 : vector<16x256xf32>
    %17 = arith.mulf %16, %16 : vector<16x256xf32>
    %cst_16 = arith.constant dense<0.000000e+00> : vector<16xf32>
    %18 = vector.multi_reduction <add>, %17, %cst_16 [1] : vector<16x256xf32> to vector<16xf32>
    %19 = vector.shape_cast %18 : vector<16xf32> to vector<16x1xf32>
    %cst_17 = arith.constant 2.560000e+02 : f32
    %20 = vector.broadcast %cst_17 : f32 to vector<16x1xf32>
    %21 = arith.divf %19, %20 : vector<16x1xf32>
    %cst_18 = arith.constant 9.99999996E-13 : f32
    %22 = vector.broadcast %cst_18 : f32 to vector<16x1xf32>
    %23 = arith.addf %21, %22 : vector<16x1xf32>
    %24 = math.rsqrt %23 : vector<16x1xf32>
    %25 = vector.broadcast %24 : vector<16x1xf32> to vector<16x256xf32>
    %26 = arith.mulf %16, %25 : vector<16x256xf32>
    %27 = vector.broadcast %9 : vector<1x256xf32> to vector<16x256xf32>
    %28 = arith.mulf %26, %27 : vector<16x256xf32>
    %29 = vector.broadcast %10 : vector<1x256xf32> to vector<16x256xf32>
    %30 = arith.addf %28, %29 : vector<16x256xf32>
    %31 = arith.truncf %30 : vector<16x256xf32> to vector<16x256xbf16>
    %c0_19 = arith.constant 0 : index
    %c0_20 = arith.constant 0 : index
    %32 = vector.load %arg3[%c0_19, %c0_20] : memref<256x768xbf16, #tpu.memory_space<vmem>>, vector<256x768xbf16>
    %cst_21 = arith.constant dense<0.000000e+00> : vector<16x768xf32>
    %33 = tpu.matmul %31, %32, %cst_21 {dimension_numbers = #tpu.dot_dimension_numbers<[1], [0], [0], [1], [0, 0, 1, 1], [], []>} : vector<16x256xbf16>, vector<256x768xbf16>, vector<16x768xf32> -> vector<16x768xf32>
    %34 = vector.broadcast %1 : vector<1x768xf32> to vector<16x768xf32>
    %35 = arith.addf %33, %34 : vector<16x768xf32>
    %36 = arith.truncf %35 : vector<16x768xf32> to vector<16x768xbf16>
    %37 = vector.extract_strided_slice %36 {offsets = [0, 0], sizes = [8, 768], strides = [1, 1]} : vector<16x768xbf16> to vector<8x768xbf16>
    %38 = tpu.iota {dimensions = array<i32: 1>} : vector<1x8xi32>
    %c0_22 = arith.constant 0 : index
    %39 = memref.load %arg1[%c0_22] : memref<2xi32, #tpu.memory_space<smem>>
    %40 = vector.broadcast %39 : i32 to vector<1x8xi32>
    %41 = arith.cmpi slt, %38, %40 : vector<1x8xi32>
    %cst_23 = arith.constant 0.000000e+00 : f32
    %cst_24 = arith.constant -1.000000e+09 : f32
    %42 = vector.broadcast %cst_23 : f32 to vector<1x8xf32>
    %43 = vector.broadcast %cst_24 : f32 to vector<1x8xf32>
    %44 = arith.select %41, %42, %43 : vector<1x8xi1>, vector<1x8xf32>
    %45 = vector.extract_strided_slice %37 {offsets = [0, 0], sizes = [8, 128], strides = [1, 1]} : vector<8x768xbf16> to vector<8x128xbf16>
    %46 = vector.extract_strided_slice %37 {offsets = [0, 256], sizes = [8, 128], strides = [1, 1]} : vector<8x768xbf16> to vector<8x128xbf16>
    %47 = vector.extract_strided_slice %37 {offsets = [0, 512], sizes = [8, 128], strides = [1, 1]} : vector<8x768xbf16> to vector<8x128xbf16>
    %cst_25 = arith.constant dense<0.000000e+00> : vector<8x8xf32>
    %48 = tpu.matmul %45, %46, %cst_25 {dimension_numbers = #tpu.dot_dimension_numbers<[1], [1], [0], [0], [0, 0, 1, 0], [], []>} : vector<8x128xbf16>, vector<8x128xbf16>, vector<8x8xf32> -> vector<8x8xf32>
    %cst_26 = arith.constant 0.0883883461 : f32
    %49 = vector.broadcast %cst_26 : f32 to vector<8x8xf32>
    %50 = arith.mulf %48, %49 : vector<8x8xf32>
    %51 = vector.broadcast %44 : vector<1x8xf32> to vector<8x8xf32>
    %52 = arith.addf %50, %51 : vector<8x8xf32>
    %cst_27 = arith.constant dense<0xFF800000> : vector<8xf32>
    %53 = vector.multi_reduction <maximumf>, %52, %cst_27 [1] : vector<8x8xf32> to vector<8xf32>
    %54 = vector.shape_cast %53 : vector<8xf32> to vector<8x1xf32>
    %55 = vector.broadcast %54 : vector<8x1xf32> to vector<8x8xf32>
    %56 = arith.subf %52, %55 : vector<8x8xf32>
    %57 = math.exp %56 : vector<8x8xf32>
    %cst_28 = arith.constant dense<0.000000e+00> : vector<8xf32>
    %58 = vector.multi_reduction <add>, %57, %cst_28 [1] : vector<8x8xf32> to vector<8xf32>
    %59 = vector.shape_cast %58 : vector<8xf32> to vector<8x1xf32>
    %60 = tpu.reciprocal %59 {approx = true} : vector<8x1xf32> -> vector<8x1xf32>
    %61 = vector.broadcast %60 : vector<8x1xf32> to vector<8x8xf32>
    %62 = arith.mulf %57, %61 : vector<8x8xf32>
    %63 = arith.truncf %62 : vector<8x8xf32> to vector<8x8xbf16>
    %cst_29 = arith.constant dense<0.000000e+00> : vector<8x128xf32>
    %64 = tpu.matmul %63, %47, %cst_29 {dimension_numbers = #tpu.dot_dimension_numbers<[1], [0], [0], [1], [0, 0, 1, 1], [], []>} : vector<8x8xbf16>, vector<8x128xbf16>, vector<8x128xf32> -> vector<8x128xf32>
    %65 = vector.extract_strided_slice %37 {offsets = [0, 128], sizes = [8, 128], strides = [1, 1]} : vector<8x768xbf16> to vector<8x128xbf16>
    %66 = vector.extract_strided_slice %37 {offsets = [0, 384], sizes = [8, 128], strides = [1, 1]} : vector<8x768xbf16> to vector<8x128xbf16>
    %67 = vector.extract_strided_slice %37 {offsets = [0, 640], sizes = [8, 128], strides = [1, 1]} : vector<8x768xbf16> to vector<8x128xbf16>
    %cst_30 = arith.constant dense<0.000000e+00> : vector<8x8xf32>
    %68 = tpu.matmul %65, %66, %cst_30 {dimension_numbers = #tpu.dot_dimension_numbers<[1], [1], [0], [0], [0, 0, 1, 0], [], []>} : vector<8x128xbf16>, vector<8x128xbf16>, vector<8x8xf32> -> vector<8x8xf32>
    %cst_31 = arith.constant 0.0883883461 : f32
    %69 = vector.broadcast %cst_31 : f32 to vector<8x8xf32>
    %70 = arith.mulf %68, %69 : vector<8x8xf32>
    %71 = vector.broadcast %44 : vector<1x8xf32> to vector<8x8xf32>
    %72 = arith.addf %70, %71 : vector<8x8xf32>
    %cst_32 = arith.constant dense<0xFF800000> : vector<8xf32>
    %73 = vector.multi_reduction <maximumf>, %72, %cst_32 [1] : vector<8x8xf32> to vector<8xf32>
    %74 = vector.shape_cast %73 : vector<8xf32> to vector<8x1xf32>
    %75 = vector.broadcast %74 : vector<8x1xf32> to vector<8x8xf32>
    %76 = arith.subf %72, %75 : vector<8x8xf32>
    %77 = math.exp %76 : vector<8x8xf32>
    %cst_33 = arith.constant dense<0.000000e+00> : vector<8xf32>
    %78 = vector.multi_reduction <add>, %77, %cst_33 [1] : vector<8x8xf32> to vector<8xf32>
    %79 = vector.shape_cast %78 : vector<8xf32> to vector<8x1xf32>
    %80 = tpu.reciprocal %79 {approx = true} : vector<8x1xf32> -> vector<8x1xf32>
    %81 = vector.broadcast %80 : vector<8x1xf32> to vector<8x8xf32>
    %82 = arith.mulf %77, %81 : vector<8x8xf32>
    %83 = arith.truncf %82 : vector<8x8xf32> to vector<8x8xbf16>
    %cst_34 = arith.constant dense<0.000000e+00> : vector<8x128xf32>
    %84 = tpu.matmul %83, %67, %cst_34 {dimension_numbers = #tpu.dot_dimension_numbers<[1], [0], [0], [1], [0, 0, 1, 1], [], []>} : vector<8x8xbf16>, vector<8x128xbf16>, vector<8x128xf32> -> vector<8x128xf32>
    %85 = tpu.concatenate %64, %84 in 1 : vector<8x128xf32>, vector<8x128xf32> -> vector<8x256xf32>
    %86 = vector.extract_strided_slice %36 {offsets = [8, 0], sizes = [8, 768], strides = [1, 1]} : vector<16x768xbf16> to vector<8x768xbf16>
    %87 = tpu.iota {dimensions = array<i32: 1>} : vector<1x8xi32>
    %c1_35 = arith.constant 1 : index
    %88 = memref.load %arg1[%c1_35] : memref<2xi32, #tpu.memory_space<smem>>
    %89 = vector.broadcast %88 : i32 to vector<1x8xi32>
    %90 = arith.cmpi slt, %87, %89 : vector<1x8xi32>
    %cst_36 = arith.constant 0.000000e+00 : f32
    %cst_37 = arith.constant -1.000000e+09 : f32
    %91 = vector.broadcast %cst_36 : f32 to vector<1x8xf32>
    %92 = vector.broadcast %cst_37 : f32 to vector<1x8xf32>
    %93 = arith.select %90, %91, %92 : vector<1x8xi1>, vector<1x8xf32>
    %94 = vector.extract_strided_slice %86 {offsets = [0, 0], sizes = [8, 128], strides = [1, 1]} : vector<8x768xbf16> to vector<8x128xbf16>
    %95 = vector.extract_strided_slice %86 {offsets = [0, 256], sizes = [8, 128], strides = [1, 1]} : vector<8x768xbf16> to vector<8x128xbf16>
    %96 = vector.extract_strided_slice %86 {offsets = [0, 512], sizes = [8, 128], strides = [1, 1]} : vector<8x768xbf16> to vector<8x128xbf16>
    %cst_38 = arith.constant dense<0.000000e+00> : vector<8x8xf32>
    %97 = tpu.matmul %94, %95, %cst_38 {dimension_numbers = #tpu.dot_dimension_numbers<[1], [1], [0], [0], [0, 0, 1, 0], [], []>} : vector<8x128xbf16>, vector<8x128xbf16>, vector<8x8xf32> -> vector<8x8xf32>
    %cst_39 = arith.constant 0.0883883461 : f32
    %98 = vector.broadcast %cst_39 : f32 to vector<8x8xf32>
    %99 = arith.mulf %97, %98 : vector<8x8xf32>
    %100 = vector.broadcast %93 : vector<1x8xf32> to vector<8x8xf32>
    %101 = arith.addf %99, %100 : vector<8x8xf32>
    %cst_40 = arith.constant dense<0xFF800000> : vector<8xf32>
    %102 = vector.multi_reduction <maximumf>, %101, %cst_40 [1] : vector<8x8xf32> to vector<8xf32>
    %103 = vector.shape_cast %102 : vector<8xf32> to vector<8x1xf32>
    %104 = vector.broadcast %103 : vector<8x1xf32> to vector<8x8xf32>
    %105 = arith.subf %101, %104 : vector<8x8xf32>
    %106 = math.exp %105 : vector<8x8xf32>
    %cst_41 = arith.constant dense<0.000000e+00> : vector<8xf32>
    %107 = vector.multi_reduction <add>, %106, %cst_41 [1] : vector<8x8xf32> to vector<8xf32>
    %108 = vector.shape_cast %107 : vector<8xf32> to vector<8x1xf32>
    %109 = tpu.reciprocal %108 {approx = true} : vector<8x1xf32> -> vector<8x1xf32>
    %110 = vector.broadcast %109 : vector<8x1xf32> to vector<8x8xf32>
    %111 = arith.mulf %106, %110 : vector<8x8xf32>
    %112 = arith.truncf %111 : vector<8x8xf32> to vector<8x8xbf16>
    %cst_42 = arith.constant dense<0.000000e+00> : vector<8x128xf32>
    %113 = tpu.matmul %112, %96, %cst_42 {dimension_numbers = #tpu.dot_dimension_numbers<[1], [0], [0], [1], [0, 0, 1, 1], [], []>} : vector<8x8xbf16>, vector<8x128xbf16>, vector<8x128xf32> -> vector<8x128xf32>
    %114 = vector.extract_strided_slice %86 {offsets = [0, 128], sizes = [8, 128], strides = [1, 1]} : vector<8x768xbf16> to vector<8x128xbf16>
    %115 = vector.extract_strided_slice %86 {offsets = [0, 384], sizes = [8, 128], strides = [1, 1]} : vector<8x768xbf16> to vector<8x128xbf16>
    %116 = vector.extract_strided_slice %86 {offsets = [0, 640], sizes = [8, 128], strides = [1, 1]} : vector<8x768xbf16> to vector<8x128xbf16>
    %cst_43 = arith.constant dense<0.000000e+00> : vector<8x8xf32>
    %117 = tpu.matmul %114, %115, %cst_43 {dimension_numbers = #tpu.dot_dimension_numbers<[1], [1], [0], [0], [0, 0, 1, 0], [], []>} : vector<8x128xbf16>, vector<8x128xbf16>, vector<8x8xf32> -> vector<8x8xf32>
    %cst_44 = arith.constant 0.0883883461 : f32
    %118 = vector.broadcast %cst_44 : f32 to vector<8x8xf32>
    %119 = arith.mulf %117, %118 : vector<8x8xf32>
    %120 = vector.broadcast %93 : vector<1x8xf32> to vector<8x8xf32>
    %121 = arith.addf %119, %120 : vector<8x8xf32>
    %cst_45 = arith.constant dense<0xFF800000> : vector<8xf32>
    %122 = vector.multi_reduction <maximumf>, %121, %cst_45 [1] : vector<8x8xf32> to vector<8xf32>
    %123 = vector.shape_cast %122 : vector<8xf32> to vector<8x1xf32>
    %124 = vector.broadcast %123 : vector<8x1xf32> to vector<8x8xf32>
    %125 = arith.subf %121, %124 : vector<8x8xf32>
    %126 = math.exp %125 : vector<8x8xf32>
    %cst_46 = arith.constant dense<0.000000e+00> : vector<8xf32>
    %127 = vector.multi_reduction <add>, %126, %cst_46 [1] : vector<8x8xf32> to vector<8xf32>
    %128 = vector.shape_cast %127 : vector<8xf32> to vector<8x1xf32>
    %129 = tpu.reciprocal %128 {approx = true} : vector<8x1xf32> -> vector<8x1xf32>
    %130 = vector.broadcast %129 : vector<8x1xf32> to vector<8x8xf32>
    %131 = arith.mulf %126, %130 : vector<8x8xf32>
    %132 = arith.truncf %131 : vector<8x8xf32> to vector<8x8xbf16>
    %cst_47 = arith.constant dense<0.000000e+00> : vector<8x128xf32>
    %133 = tpu.matmul %132, %116, %cst_47 {dimension_numbers = #tpu.dot_dimension_numbers<[1], [0], [0], [1], [0, 0, 1, 1], [], []>} : vector<8x8xbf16>, vector<8x128xbf16>, vector<8x128xf32> -> vector<8x128xf32>
    %134 = tpu.concatenate %113, %133 in 1 : vector<8x128xf32>, vector<8x128xf32> -> vector<8x256xf32>
    %135 = tpu.concatenate %85, %134 in 0 : vector<8x256xf32>, vector<8x256xf32> -> vector<16x256xf32>
    %136 = arith.truncf %135 : vector<16x256xf32> to vector<16x256xbf16>
    %c0_48 = arith.constant 0 : index
    %c0_49 = arith.constant 0 : index
    %137 = vector.load %arg4[%c0_48, %c0_49] : memref<256x256xbf16, #tpu.memory_space<vmem>>, vector<256x256xbf16>
    %cst_50 = arith.constant dense<0.000000e+00> : vector<16x256xf32>
    %138 = tpu.matmul %136, %137, %cst_50 {dimension_numbers = #tpu.dot_dimension_numbers<[1], [0], [0], [1], [0, 0, 1, 1], [], []>} : vector<16x256xbf16>, vector<256x256xbf16>, vector<16x256xf32> -> vector<16x256xf32>
    %139 = vector.broadcast %2 : vector<1x256xf32> to vector<16x256xf32>
    %140 = arith.addf %138, %139 : vector<16x256xf32>
    %141 = arith.addf %140, %30 : vector<16x256xf32>
    %cst_51 = arith.constant dense<0.000000e+00> : vector<16xf32>
    %142 = vector.multi_reduction <add>, %141, %cst_51 [1] : vector<16x256xf32> to vector<16xf32>
    %143 = vector.shape_cast %142 : vector<16xf32> to vector<16x1xf32>
    %cst_52 = arith.constant 2.560000e+02 : f32
    %144 = vector.broadcast %cst_52 : f32 to vector<16x1xf32>
    %145 = arith.divf %143, %144 : vector<16x1xf32>
    %146 = vector.broadcast %145 : vector<16x1xf32> to vector<16x256xf32>
    %147 = arith.subf %141, %146 : vector<16x256xf32>
    %148 = arith.mulf %147, %147 : vector<16x256xf32>
    %cst_53 = arith.constant dense<0.000000e+00> : vector<16xf32>
    %149 = vector.multi_reduction <add>, %148, %cst_53 [1] : vector<16x256xf32> to vector<16xf32>
    %150 = vector.shape_cast %149 : vector<16xf32> to vector<16x1xf32>
    %cst_54 = arith.constant 2.560000e+02 : f32
    %151 = vector.broadcast %cst_54 : f32 to vector<16x1xf32>
    %152 = arith.divf %150, %151 : vector<16x1xf32>
    %cst_55 = arith.constant 9.99999996E-13 : f32
    %153 = vector.broadcast %cst_55 : f32 to vector<16x1xf32>
    %154 = arith.addf %152, %153 : vector<16x1xf32>
    %155 = math.rsqrt %154 : vector<16x1xf32>
    %156 = vector.broadcast %155 : vector<16x1xf32> to vector<16x256xf32>
    %157 = arith.mulf %147, %156 : vector<16x256xf32>
    %158 = vector.broadcast %3 : vector<1x256xf32> to vector<16x256xf32>
    %159 = arith.mulf %157, %158 : vector<16x256xf32>
    %160 = vector.broadcast %4 : vector<1x256xf32> to vector<16x256xf32>
    %161 = arith.addf %159, %160 : vector<16x256xf32>
    %162 = arith.truncf %161 : vector<16x256xf32> to vector<16x256xbf16>
    %c0_56 = arith.constant 0 : index
    %c0_57 = arith.constant 0 : index
    %163 = vector.load %arg5[%c0_56, %c0_57] : memref<256x512xbf16, #tpu.memory_space<vmem>>, vector<256x512xbf16>
    %cst_58 = arith.constant dense<0.000000e+00> : vector<16x512xf32>
    %164 = tpu.matmul %162, %163, %cst_58 {dimension_numbers = #tpu.dot_dimension_numbers<[1], [0], [0], [1], [0, 0, 1, 1], [], []>} : vector<16x256xbf16>, vector<256x512xbf16>, vector<16x512xf32> -> vector<16x512xf32>
    %165 = vector.broadcast %5 : vector<1x512xf32> to vector<16x512xf32>
    %166 = arith.addf %164, %165 : vector<16x512xf32>
    %167 = arith.mulf %166, %166 : vector<16x512xf32>
    %168 = arith.mulf %166, %167 : vector<16x512xf32>
    %cst_59 = arith.constant 4.471500e-02 : f32
    %169 = vector.broadcast %cst_59 : f32 to vector<16x512xf32>
    %170 = arith.mulf %169, %168 : vector<16x512xf32>
    %171 = arith.addf %166, %170 : vector<16x512xf32>
    %cst_60 = arith.constant 0.797884583 : f32
    %172 = vector.broadcast %cst_60 : f32 to vector<16x512xf32>
    %173 = arith.mulf %172, %171 : vector<16x512xf32>
    %174 = math.tanh %173 : vector<16x512xf32>
    %cst_61 = arith.constant 1.000000e+00 : f32
    %175 = vector.broadcast %cst_61 : f32 to vector<16x512xf32>
    %176 = arith.addf %175, %174 : vector<16x512xf32>
    %cst_62 = arith.constant 5.000000e-01 : f32
    %177 = vector.broadcast %cst_62 : f32 to vector<16x512xf32>
    %178 = arith.mulf %177, %176 : vector<16x512xf32>
    %179 = arith.mulf %166, %178 : vector<16x512xf32>
    %180 = arith.truncf %179 : vector<16x512xf32> to vector<16x512xbf16>
    %c0_63 = arith.constant 0 : index
    %c0_64 = arith.constant 0 : index
    %181 = vector.load %arg6[%c0_63, %c0_64] : memref<512x256xbf16, #tpu.memory_space<vmem>>, vector<512x256xbf16>
    %cst_65 = arith.constant dense<0.000000e+00> : vector<16x256xf32>
    %182 = tpu.matmul %180, %181, %cst_65 {dimension_numbers = #tpu.dot_dimension_numbers<[1], [0], [0], [1], [0, 0, 1, 1], [], []>} : vector<16x512xbf16>, vector<512x256xbf16>, vector<16x256xf32> -> vector<16x256xf32>
    %183 = vector.broadcast %6 : vector<1x256xf32> to vector<16x256xf32>
    %184 = arith.addf %182, %183 : vector<16x256xf32>
    %185 = arith.addf %184, %161 : vector<16x256xf32>
    %cst_66 = arith.constant dense<0.000000e+00> : vector<16xf32>
    %186 = vector.multi_reduction <add>, %185, %cst_66 [1] : vector<16x256xf32> to vector<16xf32>
    %187 = vector.shape_cast %186 : vector<16xf32> to vector<16x1xf32>
    %cst_67 = arith.constant 2.560000e+02 : f32
    %188 = vector.broadcast %cst_67 : f32 to vector<16x1xf32>
    %189 = arith.divf %187, %188 : vector<16x1xf32>
    %190 = vector.broadcast %189 : vector<16x1xf32> to vector<16x256xf32>
    %191 = arith.subf %185, %190 : vector<16x256xf32>
    %192 = arith.mulf %191, %191 : vector<16x256xf32>
    %cst_68 = arith.constant dense<0.000000e+00> : vector<16xf32>
    %193 = vector.multi_reduction <add>, %192, %cst_68 [1] : vector<16x256xf32> to vector<16xf32>
    %194 = vector.shape_cast %193 : vector<16xf32> to vector<16x1xf32>
    %cst_69 = arith.constant 2.560000e+02 : f32
    %195 = vector.broadcast %cst_69 : f32 to vector<16x1xf32>
    %196 = arith.divf %194, %195 : vector<16x1xf32>
    %cst_70 = arith.constant 9.99999996E-13 : f32
    %197 = vector.broadcast %cst_70 : f32 to vector<16x1xf32>
    %198 = arith.addf %196, %197 : vector<16x1xf32>
    %199 = math.rsqrt %198 : vector<16x1xf32>
    %200 = vector.broadcast %199 : vector<16x1xf32> to vector<16x256xf32>
    %201 = arith.mulf %191, %200 : vector<16x256xf32>
    %202 = vector.broadcast %7 : vector<1x256xf32> to vector<16x256xf32>
    %203 = arith.mulf %201, %202 : vector<16x256xf32>
    %204 = vector.broadcast %8 : vector<1x256xf32> to vector<16x256xf32>
    %205 = arith.addf %203, %204 : vector<16x256xf32>
    %206 = arith.truncf %205 : vector<16x256xf32> to vector<16x256xbf16>
    %c0_71 = arith.constant 0 : index
    %c0_72 = arith.constant 0 : index
    %207 = vector.load %arg8[%c0_71, %c0_72] : memref<16x256xbf16, #tpu.memory_space<vmem>>, vector<16x256xbf16>
    tpu.vector_store %arg8[%c0_71, %c0_72], %206 {strides = array<i32>} : memref<16x256xbf16, #tpu.memory_space<vmem>>, vector<16x256xbf16>,
    return
  }
  func.func @transform_0(%arg0: i32, %arg1: memref<2xi32, #tpu.memory_space<smem>>) -> (i32, i32) {
    %c0_i32 = arith.constant 0 : i32
    %c0_i32_0 = arith.constant 0 : i32
    %c0_i32_1 = arith.constant 0 : i32
    return %c0_i32, %c0_i32_0 : i32, i32
  }
  func.func @transform_1(%arg0: i32, %arg1: memref<2xi32, #tpu.memory_space<smem>>) -> (i32, i32) {
    %c0_i32 = arith.constant 0 : i32
    %c0_i32_0 = arith.constant 0 : i32
    %c0_i32_1 = arith.constant 0 : i32
    return %c0_i32, %c0_i32_0 : i32, i32
  }
  func.func @transform_2(%arg0: i32, %arg1: memref<2xi32, #tpu.memory_space<smem>>) -> (i32, i32) {
    %c0_i32 = arith.constant 0 : i32
    %c0_i32_0 = arith.constant 0 : i32
    %c0_i32_1 = arith.constant 0 : i32
    return %c0_i32, %c0_i32_0 : i32, i32
  }
  func.func @transform_3(%arg0: i32, %arg1: memref<2xi32, #tpu.memory_space<smem>>) -> (i32, i32) {
    %c0_i32 = arith.constant 0 : i32
    %c0_i32_0 = arith.constant 0 : i32
    %c0_i32_1 = arith.constant 0 : i32
    return %c0_i32, %c0_i32_0 : i32, i32
  }
  func.func @transform_4(%arg0: i32, %arg1: memref<2xi32, #tpu.memory_space<smem>>) -> (i32, i32) {
    %c0_i32 = arith.constant 0 : i32
    %c0_i32_0 = arith.constant 0 : i32
    %c0_i32_1 = arith.constant 0 : i32
    return %c0_i32, %c0_i32_0 : i32, i32
  }
  func.func @transform_5(%arg0: i32, %arg1: memref<2xi32, #tpu.memory_space<smem>>) -> (i32, i32) {
    %c0_i32 = arith.constant 0 : i32
    %c0_i32_0 = arith.constant 0 : i32
    %c0_i32_1 = arith.constant 0 : i32
    return %c0_i32, %c0_i32_0 : i32, i32
  }
  func.func @transform_6(%arg0: i32, %arg1: memref<2xi32, #tpu.memory_space<smem>>) -> (i32, i32) {
    %c0_i32 = arith.constant 0 : i32
    %c0_i32_0 = arith.constant 0 : i32
    %c0_i32_1 = arith.constant 0 : i32
    return %c0_i32, %c0_i32_0 : i32, i32
  }
}

</mosaic_0001>

<bundles_post_ra>
// kernel: tpu_custom_call.1
= control target key start
LH: loop header
LB: loop body
LE: loop exit
PB: predicated region body
PF: predicated region fallthrough
CT: control target
= control target key end

     0   :  { %s3768_s24 = smov [#allocation3]   ;;  %s4153_s0 = inlined_call_operand.hbm [shape: s32[2], index: 0, kind: input, shape index: {}]   ;;  %s4154_s1 = inlined_call_operand.hbm [shape: f32[16,256], index: 1, kind: input, shape index: {}]   ;;  %s4155_s2 = inlined_call_operand.hbm [shape: bf16[256,768], index: 2, kind: input, shape index: {}]   ;;  %s4156_s3 = inlined_call_operand.hbm [shape: bf16[256,256], index: 3, kind: input, shape index: {}]   ;;  %s4157_s4 = inlined_call_operand.hbm [shape: bf16[256,512], index: 4, kind: input, shape index: {}]   ;;  %s4158_s5 = inlined_call_operand.hbm [shape: bf16[512,256], index: 5, kind: input, shape index: {}]   ;;  %s4159_s6 = inlined_call_operand.hbm [shape: f32[8,768], index: 6, kind: input, shape index: {}]   ;;  %s4160_s7 = inlined_call_operand.hbm [shape: bf16[16,256], index: 7, kind: output, shape index: {}]  }
   0x1   :  { %13 = dma.hbm_to_smem %s4153_s0, 16, %s3768_s24, [#allocation2] }
   0x2   :  { %3756 = dma.done.wait [#allocation2], 16 }
   0x3   :  { %3757 = vsyncadd [#allocation2], 4294967280 }
   0x4   :  { %15 = sfence }
   0x5   :  { %16 = vsyncpa [#allocation5], 0 }
   0x6   :  { %17 = vsyncpa [#allocation8], 0 }
   0x7   :  { %18 = vsyncpa [#allocation11], 0 }
   0x8   :  { %19 = vsyncpa [#allocation14], 0 }
   0x9   :  { %20 = vsyncpa [#allocation6], 0  ;;  %s3769_s27 = smov [#allocation7]  }
   0xa   :  { %s38_s28 = sshll.u32 %s3769_s27, 4  ;;  %s39_s28 = int_to_ptr.vmem [resolvable:$true] %s38_s28 }
   0xb   :  { %s3624_s29 = scalar_lea.vmem %s39_s28, 12288  ;;  %p3629_p1 = scmp.lt.s32.totalorder %s39_s28, %s39_s28 }
   0xc   :  { %p3625_p0 = scmp.ne.s32.totalorder %s39_s28, %s3624_s29  ;;  %p3630_p2 = scmp.lt.s32.totalorder %s3624_s29, %s3624_s29 }
   0xe   :  { %p3631_p3 = por %p3630_p2, %p3629_p1 }
  0x10   :  { %p3632_p4 = pnand %p3631_p3, %p3625_p0 }
  0x12   :  { %3635 = shalt.err (!%p3632_p4)
}
  0x13   :  { %s3770_s30 = smov 384   ;;  %s3771_s0 = smov 24  }
  0x14   :  { %44 = dma.hbm_to_vmem [thread:$0]  %s4155_s2, 12288, %s39_s28, [#allocation8], %s3770_s30, %s3770_s30, %s3771_s0  }
  0x15   :  { %s3772_s10 = smov [#allocation10]   ;;  %s3773_s12 = smov [#allocation4]  }
  0x16   :  { %s62_s11 = sshll.u32 %s3772_s10, 4  ;;  %s26_s13 = sshll.u32 %s3773_s12, 4  ;;  %s63_s11 = int_to_ptr.vmem [resolvable:$true] %s62_s11  ;;  %s27_s13 = int_to_ptr.vmem [resolvable:$true] %s26_s13 }
  0x17   :  { %s3644_s14 = scalar_lea.vmem %s63_s11, 8192  ;;  %p3649_p6 = scmp.lt.s32.totalorder %s63_s11, %s63_s11 }
  0x18   :  { %p3645_p5 = scmp.ne.s32.totalorder %s63_s11, %s3644_s14  ;;  %p3650_p7 = scmp.lt.s32.totalorder %s3644_s14, %s3644_s14 }
  0x1a   :  { %p3651_p8 = por %p3650_p7, %p3649_p6 }
  0x1c   :  { %p3652_p9 = pnand %p3651_p8, %p3645_p5 }
  0x1e   :  { %3655 = shalt.err (!%p3652_p9)
}
  0x1f   :  { %s3774_s15 = smov 256   ;;  %s3775_s16 = smov 16  }
  0x20   :  { %68 = dma.hbm_to_vmem [thread:$0]  %s4157_s4, 8192, %s63_s11, [#allocation11], %s3774_s15, %s3774_s15, %s3775_s16  }
  0x21   :  { %s3664_s2 = scalar_lea.vmem %s27_s13, 512  ;;  %p3669_p11 = scmp.lt.s32.totalorder %s27_s13, %s27_s13 }
  0x22   :  { %p3665_p10 = scmp.ne.s32.totalorder %s27_s13, %s3664_s2  ;;  %p3670_p12 = scmp.lt.s32.totalorder %s3664_s2, %s3664_s2 }
  0x24   :  { %p3671_p13 = por %p3670_p12, %p3669_p11 }
  0x26   :  { %p3672_p0 = pnand %p3671_p13, %p3665_p10 }
  0x28   :  { %3675 = shalt.err (!%p3672_p0)
}
  0x29   :  { %32 = dma.hbm_to_vmem [thread:$0]  %s4154_s1, 512, %s27_s13, [#allocation5], %s3774_s15, %s3774_s15, %s3775_s16  }
  0x2a   :  { %s3776_s21 = smov [#allocation9]  }
  0x2b   :  { %s50_s22 = sshll.u32 %s3776_s21, 4  ;;  %s51_s22 = int_to_ptr.vmem [resolvable:$true] %s50_s22 }
  0x2c   :  { %s3684_s23 = scalar_lea.vmem %s51_s22, 4096  ;;  %p3689_p2 = scmp.lt.s32.totalorder %s51_s22, %s51_s22 }
  0x2d   :  { %p3685_p1 = scmp.ne.s32.totalorder %s51_s22, %s3684_s23  ;;  %p3690_p3 = scmp.lt.s32.totalorder %s3684_s23, %s3684_s23 }
  0x2f   :  { %p3691_p4 = por %p3690_p3, %p3689_p2 }
  0x31   :  { %p3692_p5 = pnand %p3691_p4, %p3685_p1 }
  0x33   :  { %3695 = shalt.err (!%p3692_p5)
}
  0x34   :  { %s3777_s4 = smov 128   ;;  %s3778_s24 = smov 8  }
  0x35   :  { %56 = dma.hbm_to_vmem [thread:$0]  %s4156_s3, 4096, %s51_s22, [#allocation8], %s3777_s4, %s3777_s4, %s3778_s24  }
  0x36   :  { %s3779_s1 = smov [#allocation12]   ;;  %s3780_s28 = smov [#allocation13]  }
  0x37   :  { %s74_s27 = sshll.u32 %s3779_s1, 4  ;;  %s87_s29 = sshll.u32 %s3780_s28, 4  ;;  %s75_s27 = int_to_ptr.vmem [resolvable:$true] %s74_s27  ;;  %s88_s29 = int_to_ptr.vmem [resolvable:$true] %s87_s29 }
  0x38   :  { %s3704_s30 = scalar_lea.vmem %s75_s27, 8192  ;;  %p3709_p7 = scmp.lt.s32.totalorder %s75_s27, %s75_s27 }
  0x39   :  { %p3705_p6 = scmp.ne.s32.totalorder %s75_s27, %s3704_s30  ;;  %p3710_p8 = scmp.lt.s32.totalorder %s3704_s30, %s3704_s30 }
  0x3b   :  { %p3711_p9 = por %p3710_p8, %p3709_p7 }
  0x3d   :  { %p3712_p10 = pnand %p3711_p9, %p3705_p6 }
  0x3f   :  { %3715 = shalt.err (!%p3712_p10)
}
  0x40   :  { %80 = dma.hbm_to_vmem [thread:$0]  %s4158_s5, 8192, %s75_s27, [#allocation11], %s3777_s4, %s3777_s4, %s3778_s24  }
  0x41   :  { %s3724_s3 = scalar_lea.vmem %s88_s29, 768  ;;  %p3729_p12 = scmp.lt.s32.totalorder %s88_s29, %s88_s29 }
  0x42   :  { %p3725_p11 = scmp.ne.s32.totalorder %s88_s29, %s3724_s3  ;;  %p3730_p13 = scmp.lt.s32.totalorder %s3724_s3, %s3724_s3 }
  0x44   :  { %p3731_p0 = por %p3730_p13, %p3729_p12 }
  0x46   :  { %p3732_p1 = pnand %p3731_p0, %p3725_p11 }
  0x48   :  { %3735 = shalt.err (!%p3732_p1)
}
  0x49   :  { %90 = dma.hbm_to_vmem [thread:$0]  %s4159_s6, 768, %s88_s29, [#allocation14]  }
  0x4a   :  { %3758 = dma.done.wait [#allocation5], 512  }
  0x4b   :  { %3759 = vsyncadd [#allocation5], 4294966784 }
  0x4c   :  { %3760 = dma.done.wait [#allocation8], 16384  }
  0x4d   :  { %3761 = vsyncadd [#allocation8], 4294950912 }
  0x4e   :  { %3762 = dma.done.wait [#allocation11], 16384  }
  0x4f   :  { %3763 = vsyncadd [#allocation11], 4294950912 }
  0x50   :  { %3764 = dma.done.wait [#allocation14], 768  }
  0x51   :  { %3765 = vsyncadd [#allocation14], 4294966528  ;;  %v3852_v0 = vld [vmem:[#allocation4] sm:$0xff]  ;;  %v3854_v1 = vld [vmem:[#allocation4 + $0x8] sm:$0xff]  ;;  %vm3782_vm0 = vmmov 0   ;;  %vm1006_vm1 = vcmask 1043456  }
  0x52   :  { %v3856_v2 = vld [vmem:[#allocation4 + $0x10] sm:$0xff]  ;;  %v135_v3 = vadd.f32 %v3854_v1, %v3852_v0  ;;  %v3860_v4 = vld [vmem:[#allocation4 + $0x18] sm:$0xff]  ;;  %v3189_v11 = vld [vmem:[#allocation7 + $0x12c] ss:$24 sps:$4 sm:$0xff]   ;;  %s944_s5 = sld [smem:[#allocation3]]  ;;  %vm990_vm3 = vcmask 64512  }
  0x53   :  { %v138_v5 = vadd.f32 %v3860_v4, %v3856_v2  ;;  %v3180_v6 = vld [vmem:[#allocation7 + $0x154] ss:$24 sps:$4 sm:$0xff]   ;;  %v3182_v7 = vld [vmem:[#allocation7 + $0x150] ss:$24 sps:$4 sm:$0xff]   ;;  %v3186_v10 = vld [vmem:[#allocation7 + $0x124] ss:$24 sps:$4 sm:$0xff]  }
  0x54   :  { %136 = vadd.xlane.f32.xlu0 %v135_v3  ;;  %v3183_v8 = vld [vmem:[#allocation7 + $0x15c] ss:$24 sps:$4 sm:$0xff]   ;;  %v3185_v9 = vld [vmem:[#allocation7 + $0x158] ss:$24 sps:$4 sm:$0xff]   ;;  %807 = vmatprep.subr.bf16.mxu0 %v3180_v6  ;;  %v3191_v13 = vld [vmem:[#allocation7 + $0x128] ss:$24 sps:$4 sm:$0xff]  }
  0x55   :  { %850 = vmatprep.subr.bf16.mxu1 %v3183_v8  ;;  %808 = vmatpush1.bf16.msra.mxu0 %v3182_v7  ;;  %v3188_v12 = vld [vmem:[#allocation7 + $0x120] ss:$24 sps:$4 sm:$0xff]   ;;  %v3192_v14 = vld [vmem:[#allocation7 + $0xf4] ss:$24 sps:$4 sm:$0xff]   ;;  %v3194_v16 = vld [vmem:[#allocation7 + $0xf0] ss:$24 sps:$4 sm:$0xff]  }
  0x56   :  { %851 = vmatpush1.bf16.msra.mxu1 %v3185_v9  ;;  %809 = vmatprep.subr.bf16.mxu0 %v3186_v10  ;;  %v3195_v15 = vld [vmem:[#allocation7 + $0xfc] ss:$24 sps:$4 sm:$0xff]   ;;  %v3197_v17 = vld [vmem:[#allocation7 + $0xf8] ss:$24 sps:$4 sm:$0xff]   ;;  %v3201_v19 = vld [vmem:[#allocation7 + $0xcc] ss:$24 sps:$4 sm:$0xff]  }
  0x57   :  { %852 = vmatprep.subr.bf16.mxu1 %v3189_v11  ;;  %v3198_v18 = vld [vmem:[#allocation7 + $0xc4] ss:$24 sps:$4 sm:$0xff]   ;;  %v3200_v20 = vld [vmem:[#allocation7 + $0xc0] ss:$24 sps:$4 sm:$0xff]   ;;  %v3204_v22 = vld [vmem:[#allocation7 + $0x94] ss:$24 sps:$4 sm:$0xff]  }
  0x58   :  { %139 = vadd.xlane.f32.xlu0 %v138_v5  ;;  %v3203_v21 = vld [vmem:[#allocation7 + $0xc8] ss:$24 sps:$4 sm:$0xff]   ;;  %v3207_v23 = vld [vmem:[#allocation7 + $0x9c] ss:$24 sps:$4 sm:$0xff]   ;;  %v3209_v25 = vld [vmem:[#allocation7 + $0x98] ss:$24 sps:$4 sm:$0xff]  }
  0x59   :  { %810 = vmatpush1.bf16.msra.mxu0 %v3188_v12  ;;  %v3206_v24 = vld [vmem:[#allocation7 + $0x90] ss:$24 sps:$4 sm:$0xff]   ;;  %v3210_v26 = vld [vmem:[#allocation7 + $0x64] ss:$24 sps:$4 sm:$0xff]   ;;  %v3212_v28 = vld [vmem:[#allocation7 + $0x60] ss:$24 sps:$4 sm:$0xff]  }
  0x5a   :  { %853 = vmatpush1.bf16.msra.mxu1 %v3191_v13  ;;  %811 = vmatprep.subr.bf16.mxu0 %v3192_v14  ;;  %v3213_v27 = vld [vmem:[#allocation7 + $0x6c] ss:$24 sps:$4 sm:$0xff]   ;;  %v3215_v29 = vld [vmem:[#allocation7 + $0x68] ss:$24 sps:$4 sm:$0xff]   ;;  %v3219_v31 = vld [vmem:[#allocation7 + $0x3c] ss:$24 sps:$4 sm:$0xff]  }
  0x5b   :  { %854 = vmatprep.subr.bf16.mxu1 %v3195_v15  ;;  %v3216_v30 = vld [vmem:[#allocation7 + $0x34] ss:$24 sps:$4 sm:$0xff]   ;;  %v3218_v32 = vld [vmem:[#allocation7 + $0x30] ss:$24 sps:$4 sm:$0xff]   ;;  %v3222_v34 = vld [vmem:[#allocation7 + $0x4] ss:$24 sps:$4 sm:$0xff]  }
  0x5c   :  { %v3221_v33 = vld [vmem:[#allocation7 + $0x38] ss:$24 sps:$4 sm:$0xff]   ;;  %v3225_v35 = vld [vmem:[#allocation7 + $0xc] ss:$24 sps:$4 sm:$0xff]   ;;  %v3227_v37 = vld [vmem:[#allocation7 + $0x8] ss:$24 sps:$4 sm:$0xff]  }
  0x5d   :  { %812 = vmatpush1.bf16.msra.mxu0 %v3194_v16  ;;  %v3224_v36 = vld [vmem:[#allocation7] ss:$24 sps:$4 sm:$0xff]   ;;  %v3228_v38 = vld [vmem:[#allocation7 + $0x2d4] ss:$24 sps:$4 sm:$0xff]   ;;  %v3230_v40 = vld [vmem:[#allocation7 + $0x2d0] ss:$24 sps:$4 sm:$0xff]  }
  0x5e   :  { %855 = vmatpush1.bf16.msra.mxu1 %v3197_v17  ;;  %813 = vmatprep.subr.bf16.mxu0 %v3198_v18  ;;  %v3231_v39 = vld [vmem:[#allocation7 + $0x2dc] ss:$24 sps:$4 sm:$0xff]   ;;  %v3233_v55 = vld [vmem:[#allocation7 + $0x2d8] ss:$24 sps:$4 sm:$0xff]   ;;  %v3237_v58 = vld [vmem:[#allocation7 + $0x2ac] ss:$24 sps:$4 sm:$0xff]  }
  0x5f   :  { %856 = vmatprep.subr.bf16.mxu1 %v3201_v19  ;;  %v3234_v56 = vld [vmem:[#allocation7 + $0x2a4] ss:$24 sps:$4 sm:$0xff]   ;;  %v3236_v57 = vld [vmem:[#allocation7 + $0x2a0] ss:$24 sps:$4 sm:$0xff]   ;;  %v3240_v60 = vld [vmem:[#allocation7 + $0x274] ss:$24 sps:$4 sm:$0xff]  }
  0x60   :  { %v3239_v59 = vld [vmem:[#allocation7 + $0x2a8] ss:$24 sps:$4 sm:$0xff]   ;;  %v3243_v62 = vld [vmem:[#allocation7 + $0x27c] ss:$24 sps:$4 sm:$0xff]   ;;  %v3245_v63 = vld [vmem:[#allocation7 + $0x278] ss:$24 sps:$4 sm:$0xff]  }
  0x61   :  { %814 = vmatpush1.bf16.msra.mxu0 %v3200_v20  ;;  %v3242_v61 = vld [vmem:[#allocation7 + $0x270] ss:$24 sps:$4 sm:$0xff]   ;;  %v3255_v5 = vld [vmem:[#allocation7 + $0x21c] ss:$24 sps:$4 sm:$0xff]   ;;  %v3261_v9 = vld [vmem:[#allocation7 + $0x1ec] ss:$24 sps:$4 sm:$0xff]  }
  0x62   :  { %857 = vmatpush1.bf16.msra.mxu1 %v3203_v21  ;;  %815 = vmatprep.subr.bf16.mxu0 %v3204_v22  ;;  %v3251_v3 = vld [vmem:[#allocation7 + $0x248] ss:$24 sps:$4 sm:$0xff]   ;;  %v3257_v7 = vld [vmem:[#allocation7 + $0x218] ss:$24 sps:$4 sm:$0xff]   ;;  %v3258_v8 = vld [vmem:[#allocation7 + $0x1e4] ss:$24 sps:$4 sm:$0xff]  }
  0x63   :  { %858 = vmatprep.subr.bf16.mxu1 %v3207_v23  ;;  %v3254_v6 = vld [vmem:[#allocation7 + $0x210] ss:$24 sps:$4 sm:$0xff]   ;;  %v3260_v10 = vld [vmem:[#allocation7 + $0x1e0] ss:$24 sps:$4 sm:$0xff]   ;;  %v3264_v12 = vld [vmem:[#allocation7 + $0x1b4] ss:$24 sps:$4 sm:$0xff]  }
  0x64   :  { %v3263_v11 = vld [vmem:[#allocation7 + $0x1e8] ss:$24 sps:$4 sm:$0xff]   ;;  %v3267_v13 = vld [vmem:[#allocation7 + $0x1bc] ss:$24 sps:$4 sm:$0xff]   ;;  %v3269_v15 = vld [vmem:[#allocation7 + $0x1b8] ss:$24 sps:$4 sm:$0xff]  }
  0x65   :  { %816 = vmatpush1.bf16.msra.mxu0 %v3206_v24  ;;  %v3266_v14 = vld [vmem:[#allocation7 + $0x1b0] ss:$24 sps:$4 sm:$0xff]   ;;  %v3270_v16 = vld [vmem:[#allocation7 + $0x184] ss:$24 sps:$4 sm:$0xff]   ;;  %v3272_v18 = vld [vmem:[#allocation7 + $0x180] ss:$24 sps:$4 sm:$0xff]  }
  0x66   :  { %859 = vmatpush1.bf16.msra.mxu1 %v3209_v25  ;;  %817 = vmatprep.subr.bf16.mxu0 %v3210_v26  ;;  %v3273_v17 = vld [vmem:[#allocation7 + $0x18c] ss:$24 sps:$4 sm:$0xff]   ;;  %v3275_v19 = vld [vmem:[#allocation7 + $0x188] ss:$24 sps:$4 sm:$0xff]   ;;  %s2932_s6 = sld [smem:[#allocation3 + $0x1]]  ;;  %s3784_s11 = smov [#allocation15]  }
  0x67   :  { %860 = vmatprep.subr.bf16.mxu1 %v3213_v27  ;;  %v3278_v20 = vld [vmem:[#allocation7 + $0x164] ss:$24 sps:$4 sm:$0xff]   ;;  %v169_v27 = vlaneseq  ;;  %s2819_s12 = sshll.u32 %s3784_s11, 4  ;;  %s2820_s12 = int_to_ptr.vmem [resolvable:$true] %s2819_s12 }
  0x68   :  { %s3736_s13 = scalar_lea.vmem %s2820_s12, 256  ;;  %p3741_p3 = scmp.lt.s32.totalorder %s2820_s12, %s2820_s12 }
  0x69   :  { %818 = vmatpush1.bf16.msra.mxu0 %v3212_v28  ;;  %v3885_v28 = vshrl.u32 %v169_v27, 7  ;;  %p3737_p2 = scmp.ne.s32.totalorder %s2820_s12, %s3736_s13  ;;  %p3742_p4 = scmp.lt.s32.totalorder %s3736_s13, %s3736_s13 }
  0x6a   :  { %861 = vmatpush1.bf16.msra.mxu1 %v3215_v29  ;;  %819 = vmatprep.subr.bf16.mxu0 %v3216_v30 }
  0x6b   :  { %862 = vmatprep.subr.bf16.mxu1 %v3219_v31  ;;  %v3888_v29 = vsub.s32 1, %v3885_v28  ;;  %v3891_v30 = vsub.s32 0, %v3885_v28  ;;  %v132_v31 = vld [vmem:[#allocation13 + $0x23] ss:$8 sm:$0x3]  ;;  %p3743_p5 = por %p3742_p4, %p3741_p3 }
  0x6d   :  { %820 = vmatpush1.bf16.msra.mxu0 %v3218_v32  ;;  %p3744_p6 = pnand %p3743_p5, %p3737_p2 }
  0x6e   :  { %863 = vmatpush1.bf16.msra.mxu1 %v3221_v33  ;;  %821 = vmatprep.subr.bf16.mxu0 %v3222_v34  ;;  %v134_v33 = vld [vmem:[#allocation13 + $0x4] ss:$8 sm:$0x3] }
  0x6f   :  { %864 = vmatprep.subr.bf16.mxu1 %v3225_v35  ;;  %v176_v35 = vrot.slane %v132_v31, %v3888_v29 }
  0x71   :  { %822 = vmatpush1.bf16.msra.mxu0 %v3224_v36 }
  0x72   :  { %865 = vmatpush1.bf16.msra.mxu1 %v3227_v37  ;;  %823 = vmatprep.subr.bf16.mxu0 %v3228_v38  ;;  %v172_v37 = vrot.slane %v132_v31, %v3891_v30 }
  0x73   :  { %866 = vmatprep.subr.bf16.mxu1 %v3231_v39  ;;  %v191_v39 = vrot.slane %v134_v33, %v3888_v29 }
  0x75   :  { %824 = vmatpush2.bf16.msra.mxu0 %v3230_v40  ;;  %v187_v40 = vrot.slane %v134_v33, %v3891_v30 }
  0x76   :  { %867 = vmatpush2.bf16.msra.mxu1 %v3233_v55  ;;  %825 = vmatprep.subr.bf16.mxu0 %v3234_v56  ;;  %v3279_v55 = vld [vmem:[#allocation7 + $0x130] ss:$24 sps:$4 sm:$0xff]   ;;  %v3284_v56 = vld [vmem:[#allocation7 + $0x104] ss:$24 sps:$4 sm:$0xff]  }
  0x77   :  { %868 = vmatprep.subr.bf16.mxu1 %v3237_v58  ;;  %v3287_v58 = vld [vmem:[#allocation7 + $0xd4] ss:$24 sps:$4 sm:$0xff]  }
  0x79   :  { %826 = vmatpush2.bf16.msra.mxu0 %v3236_v57  ;;  %v3282_v57 = vld [vmem:[#allocation7 + $0x100] ss:$24 sps:$4 sm:$0xff]  }
  0x7a   :  { %869 = vmatpush2.bf16.msra.mxu1 %v3239_v59  ;;  %827 = vmatprep.subr.bf16.mxu0 %v3240_v60  ;;  %v3285_v59 = vld [vmem:[#allocation7 + $0xd0] ss:$24 sps:$4 sm:$0xff]   ;;  %v3290_v60 = vld [vmem:[#allocation7 + $0xa4] ss:$24 sps:$4 sm:$0xff]  }
  0x7b   :  { %870 = vmatprep.subr.bf16.mxu1 %v3243_v62  ;;  %v3293_v62 = vld [vmem:[#allocation7 + $0x74] ss:$24 sps:$4 sm:$0xff]  }
  0x7d   :  { %828 = vmatpush2.bf16.msra.mxu0 %v3242_v61  ;;  %v3288_v61 = vld [vmem:[#allocation7 + $0xa0] ss:$24 sps:$4 sm:$0xff]  }
  0x7e   :  { %871 = vmatpush2.bf16.msra.mxu1 %v3245_v63  ;;  %v3291_v63 = vld [vmem:[#allocation7 + $0x70] ss:$24 sps:$4 sm:$0xff]  }
  0xdd   :  { %v137_v41 = vpop.xlane.xlu0 %136 }
  0xde   :  { %v142_v42 = vmul.f32 0.00390625, %v137_v41 }
  0xe0   :  { %v3865_v43 = vsub.f32 %v3852_v0, %v142_v42  ;;  %v3868_v44 = vsub.f32 %v3854_v1, %v142_v42  ;;  %v3246_v0 = vld [vmem:[#allocation7 + $0x244] ss:$24 sps:$4 sm:$0xff]   ;;  %v3248_v1 = vld [vmem:[#allocation7 + $0x240] ss:$24 sps:$4 sm:$0xff]  }
  0xe1   :  { %v140_v45 = vpop.xlane.xlu0 %139  ;;  %829 = vmatprep.subr.bf16.mxu0 %v3246_v0  ;;  %v3296_v0 = vld [vmem:[#allocation7 + $0x44] ss:$24 sps:$4 sm:$0xff]  }
  0xe2   :  { %v143_v46 = vmul.f32 0.00390625, %v140_v45  ;;  %v148_v47 = vmul.f32 %v3865_v43, %v3865_v43  ;;  %v149_v48 = vmul.f32 %v3868_v44, %v3868_v44  ;;  %830 = vmatpush2.bf16.msra.mxu0 %v3248_v1  ;;  %v3294_v1 = vld [vmem:[#allocation7 + $0x40] ss:$24 sps:$4 sm:$0xff]  }
  0xe4   :  { %v3875_v49 = vsub.f32 %v3856_v2, %v143_v46  ;;  %v3878_v50 = vsub.f32 %v3860_v4, %v143_v46  ;;  %v152_v51 = vadd.f32 %v149_v48, %v148_v47  ;;  %v3249_v2 = vld [vmem:[#allocation7 + $0x24c] ss:$24 sps:$4 sm:$0xff]  }
  0xe5   :  { %v3252_v4 = vld [vmem:[#allocation7 + $0x214] ss:$24 sps:$4 sm:$0xff]   ;;  %872 = vmatprep.subr.bf16.mxu1 %v3249_v2 }
  0xe6   :  { %153 = vadd.xlane.f32.xlu1 %v152_v51  ;;  %v150_v52 = vmul.f32 %v3875_v49, %v3875_v49  ;;  %v151_v53 = vmul.f32 %v3878_v50, %v3878_v50  ;;  %873 = vmatpush2.bf16.msra.mxu1 %v3251_v3  ;;  %v3299_v2 = vld [vmem:[#allocation7 + $0x14] ss:$24 sps:$4 sm:$0xff]   ;;  %v3297_v3 = vld [vmem:[#allocation7 + $0x10] ss:$24 sps:$4 sm:$0xff]  }
  0xe7   :  { %831 = vmatprep.subr.bf16.mxu0 %v3252_v4  ;;  %874 = vmatprep.subr.bf16.mxu1 %v3255_v5  ;;  %v3302_v4 = vld [vmem:[#allocation7 + $0x2e4] ss:$24 sps:$4 sm:$0xff]   ;;  %v3300_v5 = vld [vmem:[#allocation7 + $0x2e0] ss:$24 sps:$4 sm:$0xff]  }
  0xe8   :  { %v155_v54 = vadd.f32 %v151_v53, %v150_v52  ;;  %832 = vmatpush2.bf16.msra.mxu0 %v3254_v6  ;;  %v3305_v6 = vld [vmem:[#allocation7 + $0x2b4] ss:$24 sps:$4 sm:$0xff]  }
  0xe9   :  { %833 = vmatprep.subr.bf16.mxu0 %v3258_v8  ;;  %v3308_v8 = vld [vmem:[#allocation7 + $0x284] ss:$24 sps:$4 sm:$0xff]  }
  0xea   :  { %156 = vadd.xlane.f32.xlu1 %v155_v54  ;;  %875 = vmatpush2.bf16.msra.mxu1 %v3257_v7  ;;  %v3276_v54 = vld [vmem:[#allocation7 + $0x160] ss:$24 sps:$4 sm:$0xff]   ;;  %v3303_v7 = vld [vmem:[#allocation7 + $0x2b0] ss:$24 sps:$4 sm:$0xff]  }
  0xeb   :  { %876 = vmatprep.subr.bf16.mxu1 %v3261_v9  ;;  %v3306_v9 = vld [vmem:[#allocation7 + $0x280] ss:$24 sps:$4 sm:$0xff]  }
  0xec   :  { %834 = vmatpush2.bf16.msra.mxu0 %v3260_v10  ;;  %v3311_v10 = vld [vmem:[#allocation7 + $0x254] ss:$24 sps:$4 sm:$0xff]  }
  0xed   :  { %835 = vmatprep.subr.bf16.mxu0 %v3264_v12  ;;  %v3314_v12 = vld [vmem:[#allocation7 + $0x224] ss:$24 sps:$4 sm:$0xff]  }
  0xee   :  { %877 = vmatpush2.bf16.msra.mxu1 %v3263_v11  ;;  %v3309_v11 = vld [vmem:[#allocation7 + $0x250] ss:$24 sps:$4 sm:$0xff]  }
  0xef   :  { %878 = vmatprep.subr.bf16.mxu1 %v3267_v13  ;;  %v3312_v13 = vld [vmem:[#allocation7 + $0x220] ss:$24 sps:$4 sm:$0xff]  }
  0xf0   :  { %836 = vmatpush2.bf16.msra.mxu0 %v3266_v14  ;;  %v3317_v14 = vld [vmem:[#allocation7 + $0x1f4] ss:$24 sps:$4 sm:$0xff]  }
  0xf1   :  { %837 = vmatprep.subr.bf16.mxu0 %v3270_v16  ;;  %v3320_v16 = vld [vmem:[#allocation7 + $0x1c4] ss:$24 sps:$4 sm:$0xff]  }
  0xf2   :  { %879 = vmatpush2.bf16.msra.mxu1 %v3269_v15  ;;  %v3315_v15 = vld [vmem:[#allocation7 + $0x1f0] ss:$24 sps:$4 sm:$0xff]  }
  0xf3   :  { %880 = vmatprep.subr.bf16.mxu1 %v3273_v17  ;;  %v3318_v17 = vld [vmem:[#allocation7 + $0x1c0] ss:$24 sps:$4 sm:$0xff]  }
  0xf4   :  { %838 = vmatpush2.bf16.msra.mxu0 %v3272_v18  ;;  %v3323_v18 = vld [vmem:[#allocation7 + $0x194] ss:$24 sps:$4 sm:$0xff]  }
  0xf5   :  { %893 = vmatprep.subr.bf16.mxu0 %v3278_v20  ;;  %v3781_v20 = vmov 0.0  }
  0xf6   :  { %881 = vmatpush2.bf16.msra.mxu1 %v3275_v19  ;;  %v3321_v19 = vld [vmem:[#allocation7 + $0x190] ss:$24 sps:$4 sm:$0xff]  }
  0xf7   :  { %3115 = vmatprep.subr.bf16.mxu1 %v3781_v20 }
 0x16f   :  { %v154_v21 = vpop.xlane.xlu1 %153 }
 0x170   :  { %v158_v22 = vmul.f32 0.00390625, %v154_v21  ;;  %v114_v21 = vld [vmem:[#allocation13] ss:$8 sm:$0xf] }
 0x172   :  { %v160_v23 = vadd.f32 1e-12, %v158_v22  ;;  %v115_v22 = vld [vmem:[#allocation13] ss:$8 sm:$0x30] }
 0x173   :  { %v157_v24 = vpop.xlane.xlu1 %156 }
 0x174   :  { %3564 = vrsqrt.f32 %v160_v23  ;;  %v159_v25 = vmul.f32 0.00390625, %v157_v24  ;;  %v3921_v23 = vor.u32 %v115_v22, %v114_v21  ;;  %v307_v24 = vsub.s32 2, %v3885_v28 }
 0x176   :  { %v161_v26 = vadd.f32 1e-12, %v159_v25  ;;  %v308_v31 = vrot.slane %v3921_v23, %v307_v24 }
 0x178   :  { %3566 = vrsqrt.f32 %v161_v26 }
 0x181   :  { %v3565_v32 = vpop.eup %3564 }
 0x182   :  { %v165_v34 = vmul.f32 %v3565_v32, %v3868_v44  ;;  %v164_v36 = vmul.f32 %v3565_v32, %v3865_v43 }
 0x184   :  { %v180_v42 = vmul.f32 %v176_v35, %v165_v34  ;;  %v179_v46 = vmul.f32 %v172_v37, %v164_v36  ;;  %v304_v34 = vrot.slane %v3921_v23, %v3888_v29 }
 0x185   :  { %v3567_v38 = vpop.eup %3566 }
 0x186   :  { %v167_v41 = vmul.f32 %v3567_v38, %v3878_v50  ;;  %v166_v45 = vmul.f32 %v3567_v38, %v3875_v49  ;;  %v3901_v44 = vadd.f32 %v191_v39, %v180_v42  ;;  %v3905_v43 = vadd.f32 %v187_v40, %v179_v46  ;;  %v3281_v49 = vld [vmem:[#allocation7 + $0x134] ss:$24 sps:$4 sm:$0xff]  }
 0x188   :  { %v182_v47 = vmul.f32 %v176_v35, %v167_v41  ;;  %v181_v48 = vmul.f32 %v172_v37, %v166_v45  ;;  %v300_v45 = vrot.slane %v3921_v23, %v3891_v30 }
 0x18a   :  { %v3903_v51 = vadd.f32 %v191_v39, %v182_v47  ;;  %v3907_v52 = vadd.f32 %v187_v40, %v181_v48 }
 0x18c   :  { %v199_v53 = vpack.c.bf16 %v3903_v51, %v3901_v44  ;;  %v3913_v50 = vpack.c.bf16 %v3907_v52, %v3905_v43 }
 0x18e   :  { %839 = vmatprep.mubr.bf16.mxu0 %v199_v53  ;;  %882 = vmatprep.mubr.bf16.mxu1 %v199_v53 }
 0x18f   :  { %840 = vmatmul.mubr.bf16.vlgmr.msra.gmra.mxu0 %v3913_v50  ;;  %883 = vmatmul.mubr.bf16.vlgmr.msra.gmra.mxu1 %v3913_v50 }
 0x190   :  { %894 = vmatpush1.bf16.msra.mxu0 %v3276_v54  ;;  %925 = vmatprep.mubr.bf16.mxu0 %v199_v53  ;;  %v315_v54 = vsub.s32 4, %v3885_v28 }
 0x191   :  { %895 = vmatprep.subr.bf16.mxu0 %v3281_v49  ;;  %3117 = vmatprep.mubr.msk.bf16.mxu1 %vm3782_vm0, %v3781_v20 }
 0x194   :  { %896 = vmatpush1.bf16.msra.mxu0 %v3279_v55  ;;  %v316_v55 = vrot.slane %v3921_v23, %v315_v54 }
 0x195   :  { %897 = vmatprep.subr.bf16.mxu0 %v3284_v56 }
 0x198   :  { %898 = vmatpush1.bf16.msra.mxu0 %v3282_v57 }
 0x199   :  { %899 = vmatprep.subr.bf16.mxu0 %v3287_v58 }
 0x19c   :  { %900 = vmatpush1.bf16.msra.mxu0 %v3285_v59 }
 0x19d   :  { %901 = vmatprep.subr.bf16.mxu0 %v3290_v60 }
 0x1a0   :  { %902 = vmatpush1.bf16.msra.mxu0 %v3288_v61 }
 0x1a1   :  { %903 = vmatprep.subr.bf16.mxu0 %v3293_v62 }
 0x1a4   :  { %904 = vmatpush1.bf16.msra.mxu0 %v3291_v63 }
 0x1a5   :  { %905 = vmatprep.subr.bf16.mxu0 %v3296_v0 }
 0x1a8   :  { %906 = vmatpush1.bf16.msra.mxu0 %v3294_v1 }
 0x1a9   :  { %907 = vmatprep.subr.bf16.mxu0 %v3299_v2 }
 0x1ac   :  { %908 = vmatpush1.bf16.msra.mxu0 %v3297_v3 }
 0x1ad   :  { %909 = vmatprep.subr.bf16.mxu0 %v3302_v4 }
 0x1b0   :  { %910 = vmatpush2.bf16.msra.mxu0 %v3300_v5 }
 0x1b1   :  { %911 = vmatprep.subr.bf16.mxu0 %v3305_v6 }
 0x1b4   :  { %912 = vmatpush2.bf16.msra.mxu0 %v3303_v7 }
 0x1b5   :  { %913 = vmatprep.subr.bf16.mxu0 %v3308_v8  ;;  %v3954_v8 = vand.u32 127, %v169_v27 }
 0x1b8   :  { %914 = vmatpush2.bf16.msra.mxu0 %v3306_v9  ;;  %v945_v9 = vstv %s944_s5 }
 0x1b9   :  { %915 = vmatprep.subr.bf16.mxu0 %v3311_v10  ;;  %vm946_vm2 = vcmp.lt.s32.totalorder %v3954_v8, %v945_v9 }
 0x1bc   :  { %916 = vmatpush2.bf16.msra.mxu0 %v3309_v11 }
 0x1bd   :  { %917 = vmatprep.subr.bf16.mxu0 %v3314_v12  ;;  %v3783_v12 = vmov -1e+09  }
 0x1c0   :  { %918 = vmatpush2.bf16.msra.mxu0 %v3312_v13  ;;  %v947_v13 = vsel %vm946_vm2, 0.0, %v3783_v12 }
 0x1c1   :  { %919 = vmatprep.subr.bf16.mxu0 %v3317_v14 }
 0x1c4   :  { %920 = vmatpush2.bf16.msra.mxu0 %v3315_v15 }
 0x1c5   :  { %921 = vmatprep.subr.bf16.mxu0 %v3320_v16 }
 0x1c8   :  { %922 = vmatpush2.bf16.msra.mxu0 %v3318_v17 }
 0x1c9   :  { %923 = vmatprep.subr.bf16.mxu0 %v3323_v18 }
 0x1cc   :  { %924 = vmatpush2.bf16.msra.mxu0 %v3321_v19 }
 0x1cf   :  { %926 = vmatmul.mubr.bf16.vlgmr.msra.gmra.mxu0 %v3913_v50  ;;  %v319_v50 = vsub.s32 5, %v3885_v28 }
 0x1d1   :  { %v320_v57 = vrot.slane %v3921_v23, %v319_v50 }
 0x24f   :  { %v841_v25 = vpop.f32.mrf.mxu0  ;;  %v884_v26 = vpop.f32.mrf.mxu1 }
 0x250   :  { %v885_v37 = vadd.f32 %v884_v26, %v308_v31  ;;  %v842_v48 = vadd.f32 %v841_v25, %v300_v45 }
 0x251   :  { %v843_v32 = vpop.f32.mrf.mxu0  ;;  %v3927_v33 = vpop.f32.mrf.mxu1 }
 0x252   :  { %v844_v40 = vadd.f32 %v843_v32, %v304_v34  ;;  %v311_v32 = vsub.s32 3, %v3885_v28 }
 0x253   :  { %v845_v35 = vpop.f32.mrf.mxu0  ;;  %v888_v36 = vpop.f32.mrf.mxu1 }
 0x254   :  { %v889_v38 = vadd.f32 %v888_v36, %v308_v31  ;;  %v846_v47 = vadd.f32 %v845_v35, %v300_v45 }
 0x255   :  { %v847_v39 = vpop.f32.mrf.mxu0  ;;  %v890_v10 = vpop.f32.mrf.mxu1 }
 0x256   :  { %v3931_v41 = vpack.c.bf16 %v889_v38, %v885_v37  ;;  %v848_v42 = vadd.f32 %v847_v39, %v304_v34  ;;  %v3939_v53 = vpack.c.bf16 %v846_v47, %v842_v48  ;;  %v312_v34 = vrot.slane %v3921_v23, %v311_v32 }
 0x258   :  { %v3935_v46 = vpack.c.bf16 %v848_v42, %v844_v40  ;;  %3116 = vmatpush3.bf16.xpose.msra.mxu1 %v3931_v41  ;;  %v891_v36 = vadd.f32 %v890_v10, %v312_v34  ;;  %v887_v38 = vadd.f32 %v3927_v33, %v312_v34 }
 0x259   :  { %3121 = vmatprep.subr.bf16.mxu1 %v3781_v20 }
 0x25a   :  { %v3965_v40 = vpack.c.bf16 %v891_v36, %v887_v38  ;;  %v1263_v34 = vrot.slane %v3935_v46, 4 }
 0x25f   :  { %3118 = vmatmul.mubr.bf16.vlgmr.msra.gmra.mxu1 %v3939_v53 }
 0x260   :  { %3123 = vmatprep.mubr.msk.bf16.mxu1 %vm3782_vm0, %v3781_v20 }
 0x28f   :  { %v927_v49 = vpop.f32.mrf.mxu0 }
 0x290   :  { %v928_v59 = vadd.f32 %v927_v49, %v316_v55 }
 0x291   :  { %v929_v56 = vpop.f32.mrf.mxu0 }
 0x292   :  { %v930_v62 = vadd.f32 %v929_v56, %v320_v57 }
 0x293   :  { %v931_v58 = vpop.f32.mrf.mxu0 }
 0x294   :  { %v932_v60 = vadd.f32 %v931_v58, %v316_v55 }
 0x295   :  { %v933_v61 = vpop.f32.mrf.mxu0 }
 0x296   :  { %v940_v63 = vpack.c.bf16 %v932_v60, %v928_v59  ;;  %v934_v0 = vadd.f32 %v933_v61, %v320_v57 }
 0x298   :  { %v1215_v1 = vrot.slane %v940_v63, 4  ;;  %v941_v2 = vpack.c.bf16 %v934_v0, %v930_v62  ;;  %v1008_v3 = vsel %vm1006_vm1, %v940_v63, 0 }
 0x299   :  { %3122 = vmatpush3.bf16.msra.mxu1 %v1008_v3  ;;  %v1155_v3 = vrot.slane %v3939_v53, 4 }
 0x29a   :  { %v1323_v4 = vrot.slane %v941_v2, 4  ;;  %3127 = vmatprep.subr.bf16.mxu1 %v3781_v20  ;;  %v1108_v5 = vsel %vm1006_vm1, %v941_v2, 0  ;;  %v3949_v6 = vsel %vm1006_vm1, %v1215_v1, 0  ;;  %v1158_v2 = vrot.slane %v3931_v41, 4 }
 0x29c   :  { %v3951_v7 = vsel %vm1006_vm1, %v1323_v4, 0 }
 0x31f   :  { %v982_v11 = vpop.f32.mrf.mxu1 }
 0x320   :  { %v988_v14 = vmul.f32 0.088388346, %v982_v11 }
 0x321   :  { %v3119_v15 = vpop.f32.mrf.mxu1 }
 0x322   :  { %v989_v16 = vadd.f32 %v988_v14, %v947_v13 }
 0x323   :  { %v985_v17 = vpop.f32.mrf.mxu1 }
 0x324   :  { %v991_v18 = vsel %vm990_vm3, %v989_v16, -inf }
 0x325   :  { %992 = vmax.xlane.f32.xlu0 %v991_v18  ;;  %v3120_v19 = vpop.f32.mrf.mxu1 }
 0x3ae   :  { %v993_v21 = vpop.xlane.xlu0 %992 }
 0x3af   :  { %v994_v27 = vsub.f32 %v989_v16, %v993_v21 }
 0x3b1   :  { %v995_v22 = vmul.f32 1.442695, %v994_v27 }
 0x3b3   :  { %3568 = vpow2.f32 %v995_v22 }
 0x3c0   :  { %v3569_v25 = vpop.eup %3568 }
 0x3c1   :  { %v997_v26 = vsel %vm990_vm3, %v3569_v25, 0.0 }
 0x3c2   :  { %998 = vadd.xlane.f32.xlu1 %v997_v26 }
 0x44b   :  { %v999_v31 = vpop.xlane.xlu1 %998 }
 0x44c   :  { %3570 = vrcp.f32 %v999_v31  ;;  %v1266_v31 = vrot.slane %v3965_v40, 4 }
 0x459   :  { %v3571_v35 = vpop.eup %3570 }
 0x45a   :  { %v1001_v37 = vmul.f32 %v3571_v35, %v3569_v25 }
 0x45c   :  { %v1002_v39 = vpack.c.bf16 %v1001_v37, %v1001_v37 }
 0x45e   :  { %3124 = vmatmul.mubr.msk.bf16.vlgmr.msra.gmra.mxu1 %vm990_vm3, %v1002_v39 }
 0x45f   :  { %3128 = vmatpush3.bf16.xpose.msra.mxu1 %v3965_v40  ;;  %3129 = vmatprep.mubr.msk.bf16.mxu1 %vm3782_vm0, %v3781_v20 }
 0x460   :  { %3133 = vmatprep.subr.bf16.mxu1 %v3781_v20 }
 0x466   :  { %3130 = vmatmul.mubr.bf16.vlgmr.msra.gmra.mxu1 %v3935_v46 }
 0x467   :  { %3134 = vmatpush3.bf16.msra.mxu1 %v1108_v5  ;;  %3135 = vmatprep.mubr.msk.bf16.mxu1 %vm3782_vm0, %v3781_v20  ;;  %v1151_v5 = vstv %s2932_s6 }
 0x468   :  { %3139 = vmatprep.subr.bf16.mxu1 %v3781_v20  ;;  %vm1152_vm4 = vcmp.lt.s32.totalorder %v3954_v8, %v1151_v5  ;;  %v3345_v5 = vld [vmem:[#allocation9] ss:$8 sps:$4 sm:$0xff]  }
 0x469   :  { %v1153_v53 = vsel %vm1152_vm4, 0.0, %v3783_v12 }
 0x51e   :  { %v3976_v23 = vpop.f32.mrf.mxu1 }
 0x520   :  { %v3125_v33 = vpop.f32.mrf.mxu1 }
 0x522   :  { %v1047_v42 = vpop.f32.mrf.mxu1 }
 0x524   :  { %v3126_v45 = vpop.f32.mrf.mxu1 }
 0x526   :  { %v1084_v47 = vpop.f32.mrf.mxu1 }
 0x527   :  { %v1090_v48 = vmul.f32 0.088388346, %v1084_v47 }
 0x528   :  { %v3131_v54 = vpop.f32.mrf.mxu1 }
 0x529   :  { %v1091_v50 = vadd.f32 %v1090_v48, %v947_v13 }
 0x52a   :  { %v1087_v49 = vpop.f32.mrf.mxu1 }
 0x52b   :  { %v1092_v55 = vsel %vm990_vm3, %v1091_v50, -inf  ;;  %v3324_v49 = vld [vmem:[#allocation9 + $0x70] ss:$8 sps:$4 sm:$0xff]  }
 0x52c   :  { %1093 = vmax.xlane.f32.xlu0 %v1092_v55  ;;  %v3132_v56 = vpop.f32.mrf.mxu1  ;;  %v3326_v55 = vld [vmem:[#allocation9 + $0x74] ss:$8 sps:$4 sm:$0xff]  }
 0x52d   :  { %v3329_v56 = vld [vmem:[#allocation9 + $0x64] ss:$8 sps:$4 sm:$0xff]   ;;  %1575 = vmatprep.subr.bf16.mxu0 %v3326_v55 }
 0x52e   :  { %1576 = vmatpush1.bf16.msra.mxu0 %v3324_v49 }
 0x52f   :  { %1577 = vmatprep.subr.bf16.mxu0 %v3329_v56 }
 0x5b5   :  { %v1094_v57 = vpop.xlane.xlu0 %1093 }
 0x5b6   :  { %v1095_v58 = vsub.f32 %v1091_v50, %v1094_v57  ;;  %v3327_v57 = vld [vmem:[#allocation9 + $0x60] ss:$8 sps:$4 sm:$0xff]  }
 0x5b7   :  { %1578 = vmatpush1.bf16.msra.mxu0 %v3327_v57  ;;  %v3372_v57 = vld [vmem:[#allocation10 + $0xe0] ss:$16 sps:$4 sm:$0xff]  }
 0x5b8   :  { %v1096_v59 = vmul.f32 1.442695, %v1095_v58  ;;  %v3332_v58 = vld [vmem:[#allocation9 + $0x54] ss:$8 sps:$4 sm:$0xff]  }
 0x5b9   :  { %1579 = vmatprep.subr.bf16.mxu0 %v3332_v58  ;;  %v3375_v58 = vld [vmem:[#allocation10 + $0xe8] ss:$16 sps:$4 sm:$0xff]  }
 0x5ba   :  { %3572 = vpow2.f32 %v1096_v59  ;;  %v3330_v59 = vld [vmem:[#allocation9 + $0x50] ss:$8 sps:$4 sm:$0xff]  }
 0x5bb   :  { %1580 = vmatpush1.bf16.msra.mxu0 %v3330_v59  ;;  %v3377_v59 = vld [vmem:[#allocation10 + $0xec] ss:$16 sps:$4 sm:$0xff]  }
 0x5c7   :  { %v3573_v60 = vpop.eup %3572 }
 0x5c8   :  { %v1098_v61 = vsel %vm990_vm3, %v3573_v60, 0.0 }
 0x5c9   :  { %1099 = vadd.xlane.f32.xlu1 %v1098_v61  ;;  %v3333_v61 = vld [vmem:[#allocation9 + $0x40] ss:$8 sps:$4 sm:$0xff]  }
 0x652   :  { %v1100_v62 = vpop.xlane.xlu1 %1099 }
 0x653   :  { %3574 = vrcp.f32 %v1100_v62  ;;  %v3338_v62 = vld [vmem:[#allocation9 + $0x34] ss:$8 sps:$4 sm:$0xff]  }
 0x660   :  { %v3575_v63 = vpop.eup %3574 }
 0x661   :  { %v1102_v0 = vmul.f32 %v3575_v63, %v3573_v60  ;;  %v3335_v60 = vld [vmem:[#allocation9 + $0x44] ss:$8 sps:$4 sm:$0xff]   ;;  %v3336_v63 = vld [vmem:[#allocation9 + $0x30] ss:$8 sps:$4 sm:$0xff]  }
 0x662   :  { %1581 = vmatprep.subr.bf16.mxu0 %v3335_v60  ;;  %v3380_v60 = vld [vmem:[#allocation10 + $0xc4] ss:$16 sps:$4 sm:$0xff]  }
 0x663   :  { %v1103_v1 = vpack.c.bf16 %v1102_v0, %v1102_v0  ;;  %1582 = vmatpush1.bf16.msra.mxu0 %v3333_v61  ;;  %v3341_v0 = vld [vmem:[#allocation9 + $0x24] ss:$8 sps:$4 sm:$0xff]  }
 0x664   :  { %1583 = vmatprep.subr.bf16.mxu0 %v3338_v62  ;;  %v3383_v61 = vld [vmem:[#allocation10 + $0xcc] ss:$16 sps:$4 sm:$0xff]   ;;  %v3378_v62 = vld [vmem:[#allocation10 + $0xc0] ss:$16 sps:$4 sm:$0xff]  }
 0x665   :  { %3136 = vmatmul.mubr.msk.bf16.vlgmr.msra.gmra.mxu1 %vm990_vm3, %v1103_v1  ;;  %v3339_v1 = vld [vmem:[#allocation9 + $0x20] ss:$8 sps:$4 sm:$0xff]  }
 0x666   :  { %3140 = vmatpush3.bf16.xpose.msra.mxu1 %v1158_v2  ;;  %3141 = vmatprep.mubr.msk.bf16.mxu1 %vm3782_vm0, %v3781_v20  ;;  %v3344_v2 = vld [vmem:[#allocation9 + $0x14] ss:$8 sps:$4 sm:$0xff]  }
 0x667   :  { %3145 = vmatprep.subr.bf16.mxu1 %v3781_v20  ;;  %1584 = vmatpush1.bf16.msra.mxu0 %v3336_v63  ;;  %v3389_v63 = vld [vmem:[#allocation10 + $0xac] ss:$16 sps:$4 sm:$0xff]  }
 0x668   :  { %1585 = vmatprep.subr.bf16.mxu0 %v3341_v0  ;;  %v3384_v0 = vld [vmem:[#allocation10 + $0xa0] ss:$16 sps:$4 sm:$0xff]  }
 0x66b   :  { %1586 = vmatpush1.bf16.msra.mxu0 %v3339_v1  ;;  %v3387_v1 = vld [vmem:[#allocation10 + $0xa8] ss:$16 sps:$4 sm:$0xff]  }
 0x66c   :  { %1587 = vmatprep.subr.bf16.mxu0 %v3344_v2  ;;  %v3392_v2 = vld [vmem:[#allocation10 + $0x84] ss:$16 sps:$4 sm:$0xff]  }
 0x66d   :  { %3142 = vmatmul.mubr.bf16.vlgmr.msra.gmra.mxu1 %v1155_v3  ;;  %v3342_v3 = vld [vmem:[#allocation9 + $0x10] ss:$8 sps:$4 sm:$0xff]  }
 0x66e   :  { %3146 = vmatpush3.bf16.msra.mxu1 %v3949_v6  ;;  %3147 = vmatprep.mubr.msk.bf16.mxu1 %vm3782_vm0, %v3781_v20 }
 0x66f   :  { %3151 = vmatprep.subr.bf16.mxu1 %v3781_v20  ;;  %1588 = vmatpush1.bf16.msra.mxu0 %v3342_v3  ;;  %v3395_v3 = vld [vmem:[#allocation10 + $0x8c] ss:$16 sps:$4 sm:$0xff]  }
 0x725   :  { %v3990_v41 = vpop.f32.mrf.mxu1 }
 0x727   :  { %v3137_v4 = vpop.f32.mrf.mxu1 }
 0x728   :  { %v3347_v4 = vld [vmem:[#allocation9 + $0x4] ss:$8 sps:$4 sm:$0xff]  }
 0x729   :  { %v1147_v9 = vpop.f32.mrf.mxu1  ;;  %1589 = vmatprep.subr.bf16.mxu0 %v3347_v4  ;;  %v3390_v4 = vld [vmem:[#allocation10 + $0x80] ss:$16 sps:$4 sm:$0xff]  }
 0x72a   :  { %v3350_v9 = vld [vmem:[#allocation9 + $0xf4] ss:$8 sps:$4 sm:$0xff]   ;;  %1590 = vmatpush1.bf16.msra.mxu0 %v3345_v5  ;;  %v3393_v5 = vld [vmem:[#allocation10 + $0x88] ss:$16 sps:$4 sm:$0xff]  }
 0x72b   :  { %v3138_v10 = vpop.f32.mrf.mxu1  ;;  %1591 = vmatprep.subr.bf16.mxu0 %v3350_v9  ;;  %v3398_v9 = vld [vmem:[#allocation10 + $0x64] ss:$16 sps:$4 sm:$0xff]  }
 0x72c   :  { %v3348_v10 = vld [vmem:[#allocation9 + $0xf0] ss:$8 sps:$4 sm:$0xff]  }
 0x72d   :  { %v1194_v11 = vpop.f32.mrf.mxu1 }
 0x72e   :  { %v1200_v13 = vmul.f32 0.088388346, %v1194_v11  ;;  %v3353_v11 = vld [vmem:[#allocation9 + $0xe4] ss:$8 sps:$4 sm:$0xff]   ;;  %1592 = vmatpush2.bf16.msra.mxu0 %v3348_v10 }
 0x72f   :  { %v3143_v14 = vpop.f32.mrf.mxu1  ;;  %1593 = vmatprep.subr.bf16.mxu0 %v3353_v11  ;;  %v3401_v10 = vld [vmem:[#allocation10 + $0x6c] ss:$16 sps:$4 sm:$0xff]   ;;  %v3396_v11 = vld [vmem:[#allocation10 + $0x60] ss:$16 sps:$4 sm:$0xff]  }
 0x730   :  { %v1201_v6 = vadd.f32 %v1200_v13, %v1153_v53  ;;  %v3356_v13 = vld [vmem:[#allocation9 + $0xd4] ss:$8 sps:$4 sm:$0xff]   ;;  %v3354_v14 = vld [vmem:[#allocation9 + $0xd0] ss:$8 sps:$4 sm:$0xff]  }
 0x731   :  { %v1197_v15 = vpop.f32.mrf.mxu1 }
 0x732   :  { %v1202_v16 = vsel %vm990_vm3, %v1201_v6, -inf  ;;  %v3357_v15 = vld [vmem:[#allocation9 + $0xc0] ss:$8 sps:$4 sm:$0xff]  }
 0x733   :  { %1203 = vmax.xlane.f32.xlu0 %v1202_v16  ;;  %v3144_v17 = vpop.f32.mrf.mxu1  ;;  %v3362_v16 = vld [vmem:[#allocation9 + $0xb4] ss:$8 sps:$4 sm:$0xff]  }
 0x734   :  { %v3360_v17 = vld [vmem:[#allocation9 + $0xb0] ss:$8 sps:$4 sm:$0xff]  }
 0x7bc   :  { %v1204_v18 = vpop.xlane.xlu0 %1203 }
 0x7bd   :  { %v1205_v19 = vsub.f32 %v1201_v6, %v1204_v18  ;;  %v3359_v6 = vld [vmem:[#allocation9 + $0xc4] ss:$8 sps:$4 sm:$0xff]  }
 0x7be   :  { %v3365_v18 = vld [vmem:[#allocation9 + $0xa4] ss:$8 sps:$4 sm:$0xff]  }
 0x7bf   :  { %v1206_v21 = vmul.f32 1.442695, %v1205_v19  ;;  %v3363_v19 = vld [vmem:[#allocation9 + $0xa0] ss:$8 sps:$4 sm:$0xff]  }
 0x7c1   :  { %3576 = vpow2.f32 %v1206_v21  ;;  %v3368_v21 = vld [vmem:[#allocation9 + $0x94] ss:$8 sps:$4 sm:$0xff]  }
 0x7ce   :  { %v3577_v27 = vpop.eup %3576 }
 0x7cf   :  { %v1208_v22 = vsel %vm990_vm3, %v3577_v27, 0.0 }
 0x7d0   :  { %1209 = vadd.xlane.f32.xlu1 %v1208_v22 }
 0x859   :  { %v1210_v8 = vpop.xlane.xlu1 %1209 }
 0x85a   :  { %3578 = vrcp.f32 %v1210_v8 }
 0x867   :  { %v3579_v25 = vpop.eup %3578 }
 0x868   :  { %v1212_v12 = vmul.f32 %v3579_v25, %v3577_v27  ;;  %v3366_v27 = vld [vmem:[#allocation9 + $0x90] ss:$8 sps:$4 sm:$0xff]  }
 0x86a   :  { %v1213_v26 = vpack.c.bf16 %v1212_v12, %v1212_v12 }
 0x86c   :  { %3148 = vmatmul.mubr.msk.bf16.vlgmr.msra.gmra.mxu1 %vm990_vm3, %v1213_v26  ;;  %v3371_v26 = vld [vmem:[#allocation9 + $0x84] ss:$8 sps:$4 sm:$0xff]  }
 0x86d   :  { %3152 = vmatpush3.bf16.xpose.msra.mxu1 %v1266_v31  ;;  %3153 = vmatprep.mubr.msk.bf16.mxu1 %vm3782_vm0, %v3781_v20  ;;  %v3369_v31 = vld [vmem:[#allocation9 + $0x80] ss:$8 sps:$4 sm:$0xff]  }
 0x86e   :  { %3157 = vmatprep.subr.bf16.mxu1 %v3781_v20 }
 0x874   :  { %3154 = vmatmul.mubr.bf16.vlgmr.msra.gmra.mxu1 %v1263_v34 }
 0x875   :  { %3158 = vmatpush3.bf16.msra.mxu1 %v3951_v7  ;;  %3159 = vmatprep.mubr.msk.bf16.mxu1 %vm3782_vm0, %v3781_v20 }
 0x92c   :  { %v4005_v35 = vpop.f32.mrf.mxu1 }
 0x92e   :  { %v3149_v36 = vpop.f32.mrf.mxu1 }
 0x930   :  { %v1259_v37 = vpop.f32.mrf.mxu1 }
 0x931   :  { %v1370_v37 = vpack.c.bf16 %v4005_v35, %v3976_v23 }
 0x932   :  { %v3150_v38 = vpop.f32.mrf.mxu1 }
 0x934   :  { %v1302_v39 = vpop.f32.mrf.mxu1 }
 0x935   :  { %v1308_v40 = vmul.f32 0.088388346, %v1302_v39 }
 0x936   :  { %v3155_v33 = vpop.f32.mrf.mxu1 }
 0x937   :  { %v1309_v42 = vadd.f32 %v1308_v40, %v1153_v53  ;;  %v3351_v53 = vld [vmem:[#allocation9 + $0xe0] ss:$8 sps:$4 sm:$0xff]  }
 0x938   :  { %v1305_v45 = vpop.f32.mrf.mxu1  ;;  %1594 = vmatpush2.bf16.msra.mxu0 %v3351_v53  ;;  %v118_v33 = vld [vmem:[#allocation13 + $0x1] ss:$8 sm:$0x3] }
 0x939   :  { %v1310_v47 = vsel %vm990_vm3, %v1309_v42, -inf  ;;  %1595 = vmatprep.subr.bf16.mxu0 %v3356_v13  ;;  %v1412_v45 = vrot.slane %v118_v33, %v3888_v29  ;;  %v3399_v53 = vld [vmem:[#allocation10 + $0x68] ss:$16 sps:$4 sm:$0xff]   ;;  %v3404_v13 = vld [vmem:[#allocation10 + $0x44] ss:$16 sps:$4 sm:$0xff]  }
 0x93a   :  { %1311 = vmax.xlane.f32.xlu0 %v1310_v47  ;;  %v3156_v46 = vpop.f32.mrf.mxu1 }
 0x93c   :  { %1596 = vmatpush2.bf16.msra.mxu0 %v3354_v14  ;;  %v3407_v14 = vld [vmem:[#allocation10 + $0x4c] ss:$16 sps:$4 sm:$0xff]  }
 0x93d   :  { %1597 = vmatprep.subr.bf16.mxu0 %v3359_v6  ;;  %v3402_v6 = vld [vmem:[#allocation10 + $0x40] ss:$16 sps:$4 sm:$0xff]  }
 0x940   :  { %1598 = vmatpush2.bf16.msra.mxu0 %v3357_v15  ;;  %v3405_v15 = vld [vmem:[#allocation10 + $0x48] ss:$16 sps:$4 sm:$0xff]  }
 0x941   :  { %1599 = vmatprep.subr.bf16.mxu0 %v3362_v16  ;;  %v3410_v16 = vld [vmem:[#allocation10 + $0x24] ss:$16 sps:$4 sm:$0xff]  }
 0x944   :  { %1600 = vmatpush2.bf16.msra.mxu0 %v3360_v17  ;;  %v3413_v17 = vld [vmem:[#allocation10 + $0x2c] ss:$16 sps:$4 sm:$0xff]  }
 0x945   :  { %1601 = vmatprep.subr.bf16.mxu0 %v3365_v18  ;;  %v3408_v18 = vld [vmem:[#allocation10 + $0x20] ss:$16 sps:$4 sm:$0xff]  }
 0x948   :  { %1602 = vmatpush2.bf16.msra.mxu0 %v3363_v19  ;;  %v3411_v19 = vld [vmem:[#allocation10 + $0x28] ss:$16 sps:$4 sm:$0xff]  }
 0x949   :  { %1603 = vmatprep.subr.bf16.mxu0 %v3368_v21  ;;  %v3416_v21 = vld [vmem:[#allocation10 + $0x4] ss:$16 sps:$4 sm:$0xff]  }
 0x94c   :  { %1604 = vmatpush2.bf16.msra.mxu0 %v3366_v27  ;;  %v3419_v27 = vld [vmem:[#allocation10 + $0xc] ss:$16 sps:$4 sm:$0xff]  }
 0x94d   :  { %1605 = vmatprep.subr.bf16.mxu0 %v3371_v26  ;;  %v3420_v26 = vld [vmem:[#allocation10 + $0x1e0] ss:$16 sps:$4 sm:$0xff]  }
 0x950   :  { %1606 = vmatpush2.bf16.msra.mxu0 %v3369_v31  ;;  %v3423_v31 = vld [vmem:[#allocation10 + $0x1e8] ss:$16 sps:$4 sm:$0xff]  }
 0x951   :  { %2134 = vmatprep.subr.bf16.mxu0 %v3377_v59  ;;  %v3446_v59 = vld [vmem:[#allocation10 + $0x164] ss:$16 sps:$4 sm:$0xff]  }
 0x9c3   :  { %v1312_v48 = vpop.xlane.xlu0 %1311 }
 0x9c4   :  { %v1313_v54 = vsub.f32 %v1309_v42, %v1312_v48  ;;  %v1408_v42 = vrot.slane %v118_v33, %v3891_v30 }
 0x9c6   :  { %v1314_v7 = vmul.f32 1.442695, %v1313_v54 }
 0x9c8   :  { %3580 = vpow2.f32 %v1314_v7 }
 0x9d5   :  { %v4008_v50 = vpop.eup %3580 }
 0x9d6   :  { %v1316_v20 = vsel %vm990_vm3, %v4008_v50, 0.0 }
 0x9d7   :  { %1317 = vadd.xlane.f32.xlu1 %v1316_v20 }
 0xa60   :  { %v1318_v22 = vpop.xlane.xlu1 %1317 }
 0xa61   :  { %3582 = vrcp.f32 %v1318_v22  ;;  %v3414_v22 = vld [vmem:[#allocation10] ss:$16 sps:$4 sm:$0xff]  }
 0xa6e   :  { %v3583_v8 = vpop.eup %3582 }
 0xa6f   :  { %v1320_v25 = vmul.f32 %v3583_v8, %v4008_v50  ;;  %v3417_v8 = vld [vmem:[#allocation10 + $0x8] ss:$16 sps:$4 sm:$0xff]  }
 0xa71   :  { %v1321_v12 = vpack.c.bf16 %v1320_v25, %v1320_v25  ;;  %v3422_v25 = vld [vmem:[#allocation10 + $0x1e4] ss:$16 sps:$4 sm:$0xff]  }
 0xa73   :  { %3160 = vmatmul.mubr.msk.bf16.vlgmr.msra.gmra.mxu1 %vm990_vm3, %v1321_v12  ;;  %v3425_v12 = vld [vmem:[#allocation10 + $0x1ec] ss:$16 sps:$4 sm:$0xff]  }
 0xb33   :  { %v1364_v34 = vpop.f32.mrf.mxu1 }
 0xb34   :  { %v1371_v36 = vpack.c.bf16 %v1364_v34, %v3990_v41 }
 0xb35   :  { %v3161_v38 = vpop.f32.mrf.mxu1 }
 0xb36   :  { %1607 = vmatprep.mubr.bf16.mxu0 %v1371_v36 }
 0xb37   :  { %v1367_v39 = vpop.f32.mrf.mxu1  ;;  %1608 = vmatmul.mubr.bf16.vlgmr.msra.gmra.mxu0 %v1370_v37 }
 0xb38   :  { %2135 = vmatpush1.bf16.msra.mxu0 %v3375_v58  ;;  %v3443_v58 = vld [vmem:[#allocation10 + $0x18c] ss:$16 sps:$4 sm:$0xff]  }
 0xb39   :  { %v3162_v40 = vpop.f32.mrf.mxu1  ;;  %2136 = vmatprep.subr.bf16.mxu0 %v3383_v61  ;;  %v3444_v61 = vld [vmem:[#allocation10 + $0x160] ss:$16 sps:$4 sm:$0xff]  }
 0xbf7   :  { %v1609_v47 = vpop.f32.mrf.mxu0 }
 0xbf8   :  { %v1610_v46 = vadd.f32 %v1609_v47, %v1408_v42 }
 0xbf9   :  { %v1611_v48 = vpop.f32.mrf.mxu0 }
 0xbfa   :  { %v1612_v54 = vadd.f32 %v1611_v48, %v1412_v45  ;;  %v4020_v41 = vadd.f32 %v1610_v46, %v3905_v43 }
 0xbfb   :  { %v1613_v7 = vpop.f32.mrf.mxu0 }
 0xbfc   :  { %v4023_v23 = vadd.f32 %v1612_v54, %v3901_v44  ;;  %v1614_v35 = vadd.f32 %v1613_v7, %v1408_v42  ;;  %v3374_v44 = vld [vmem:[#allocation10 + $0xe4] ss:$16 sps:$4 sm:$0xff]  }
 0xbfd   :  { %v1615_v50 = vpop.f32.mrf.mxu0  ;;  %2091 = vmatprep.subr.bf16.mxu1 %v3374_v44  ;;  %v3441_v44 = vld [vmem:[#allocation10 + $0x188] ss:$16 sps:$4 sm:$0xff]  }
 0xbfe   :  { %v1616_v20 = vadd.f32 %v1615_v50, %v1412_v45  ;;  %v1622_v49 = vadd.f32 %v4023_v23, %v4020_v41  ;;  %v4028_v55 = vadd.f32 %v1614_v35, %v3907_v52  ;;  %2092 = vmatpush1.bf16.msra.mxu1 %v3372_v57  ;;  %v3381_v52 = vld [vmem:[#allocation10 + $0xc8] ss:$16 sps:$4 sm:$0xff]   ;;  %v3426_v35 = vld [vmem:[#allocation10 + $0x1c0] ss:$16 sps:$4 sm:$0xff]  }
 0xbff   :  { %2093 = vmatprep.subr.bf16.mxu1 %v3380_v60  ;;  %2137 = vmatpush1.bf16.msra.mxu0 %v3381_v52  ;;  %v3429_v50 = vld [vmem:[#allocation10 + $0x1c8] ss:$16 sps:$4 sm:$0xff]   ;;  %v3438_v57 = vld [vmem:[#allocation10 + $0x180] ss:$16 sps:$4 sm:$0xff]   ;;  %v3449_v60 = vld [vmem:[#allocation10 + $0x16c] ss:$16 sps:$4 sm:$0xff]  }
 0xc00   :  { %v4031_v56 = vadd.f32 %v1616_v20, %v3903_v51  ;;  %1623 = vadd.xlane.f32.xlu0 %v1622_v49  ;;  %v3386_v51 = vld [vmem:[#allocation10 + $0xa4] ss:$16 sps:$4 sm:$0xff]   ;;  %2138 = vmatprep.subr.bf16.mxu0 %v3389_v63  ;;  %v3437_v49 = vld [vmem:[#allocation10 + $0x1ac] ss:$16 sps:$4 sm:$0xff]   ;;  %v3450_v63 = vld [vmem:[#allocation10 + $0x140] ss:$16 sps:$4 sm:$0xff]  }
 0xc01   :  { %v3434_v20 = vld [vmem:[#allocation10 + $0x1a4] ss:$16 sps:$4 sm:$0xff]  }
 0xc02   :  { %v1625_v43 = vadd.f32 %v4031_v56, %v4028_v55  ;;  %2094 = vmatpush1.bf16.msra.mxu1 %v3378_v62  ;;  %v3447_v62 = vld [vmem:[#allocation10 + $0x168] ss:$16 sps:$4 sm:$0xff]   ;;  %v3452_v52 = vld [vmem:[#allocation10 + $0x144] ss:$16 sps:$4 sm:$0xff]  }
 0xc03   :  { %2095 = vmatprep.subr.bf16.mxu1 %v3386_v51  ;;  %2139 = vmatpush1.bf16.msra.mxu0 %v3387_v1  ;;  %v3455_v51 = vld [vmem:[#allocation10 + $0x14c] ss:$16 sps:$4 sm:$0xff]   ;;  %v3458_v1 = vld [vmem:[#allocation10 + $0x124] ss:$16 sps:$4 sm:$0xff]  }
 0xc04   :  { %1626 = vadd.xlane.f32.xlu1 %v1625_v43  ;;  %2140 = vmatprep.subr.bf16.mxu0 %v3395_v3  ;;  %v3440_v43 = vld [vmem:[#allocation10 + $0x184] ss:$16 sps:$4 sm:$0xff]   ;;  %v3456_v3 = vld [vmem:[#allocation10 + $0x120] ss:$16 sps:$4 sm:$0xff]  }
 0xc06   :  { %2096 = vmatpush1.bf16.msra.mxu1 %v3384_v0  ;;  %v3453_v0 = vld [vmem:[#allocation10 + $0x148] ss:$16 sps:$4 sm:$0xff]  }
 0xc07   :  { %2097 = vmatprep.subr.bf16.mxu1 %v3392_v2  ;;  %2141 = vmatpush1.bf16.msra.mxu0 %v3393_v5  ;;  %v3461_v2 = vld [vmem:[#allocation10 + $0x12c] ss:$16 sps:$4 sm:$0xff]   ;;  %v3464_v5 = vld [vmem:[#allocation10 + $0x104] ss:$16 sps:$4 sm:$0xff]  }
 0xc08   :  { %2142 = vmatprep.subr.bf16.mxu0 %v3401_v10  ;;  %v3462_v10 = vld [vmem:[#allocation10 + $0x100] ss:$16 sps:$4 sm:$0xff]  }
 0xc0a   :  { %2098 = vmatpush1.bf16.msra.mxu1 %v3390_v4  ;;  %v3459_v4 = vld [vmem:[#allocation10 + $0x128] ss:$16 sps:$4 sm:$0xff]  }
 0xc0b   :  { %2099 = vmatprep.subr.bf16.mxu1 %v3398_v9  ;;  %2143 = vmatpush1.bf16.msra.mxu0 %v3399_v53  ;;  %v3467_v9 = vld [vmem:[#allocation10 + $0x10c] ss:$16 sps:$4 sm:$0xff]  }
 0xc0c   :  { %2144 = vmatprep.subr.bf16.mxu0 %v3407_v14  ;;  %v3470_v53 = vld [vmem:[#allocation12 + $0x74] ss:$8 sps:$4 sm:$0xff]  }
 0xc0e   :  { %2100 = vmatpush1.bf16.msra.mxu1 %v3396_v11  ;;  %v3465_v11 = vld [vmem:[#allocation10 + $0x108] ss:$16 sps:$4 sm:$0xff]  }
 0xc0f   :  { %2101 = vmatprep.subr.bf16.mxu1 %v3404_v13  ;;  %2145 = vmatpush1.bf16.msra.mxu0 %v3405_v15  ;;  %v3473_v13 = vld [vmem:[#allocation12 + $0x174] ss:$8 sps:$4 sm:$0xff]  }
 0xc10   :  { %2146 = vmatprep.subr.bf16.mxu0 %v3413_v17 }
 0xc12   :  { %2102 = vmatpush1.bf16.msra.mxu1 %v3402_v6 }
 0xc13   :  { %2103 = vmatprep.subr.bf16.mxu1 %v3410_v16  ;;  %2147 = vmatpush1.bf16.msra.mxu0 %v3411_v19  ;;  %v120_v19 = vld [vmem:[#allocation13 + $0x11] ss:$8 sm:$0x3] }
 0xc14   :  { %2148 = vmatprep.subr.bf16.mxu0 %v3419_v27  ;;  %v122_v27 = vld [vmem:[#allocation13 + $0x21] ss:$8 sm:$0x3] }
 0xc16   :  { %2104 = vmatpush1.bf16.msra.mxu1 %v3408_v18 }
 0xc17   :  { %2105 = vmatprep.subr.bf16.mxu1 %v3416_v21  ;;  %2149 = vmatpush1.bf16.msra.mxu0 %v3417_v8  ;;  %v1658_v8 = vrot.slane %v120_v19, %v3891_v30 }
 0xc18   :  { %2150 = vmatprep.subr.bf16.mxu0 %v3425_v12 }
 0xc1a   :  { %2106 = vmatpush1.bf16.msra.mxu1 %v3414_v22 }
 0xc1b   :  { %2107 = vmatprep.subr.bf16.mxu1 %v3422_v25  ;;  %2151 = vmatpush2.bf16.msra.mxu0 %v3423_v31  ;;  %v1662_v25 = vrot.slane %v120_v19, %v3888_v29  ;;  %v1673_v31 = vrot.slane %v122_v27, %v3891_v30  ;;  %v3525_v19 = vld [vmem:[#allocation12 + $0x1e0] ss:$8 sps:$4 sm:$0xff]  }
 0xc1e   :  { %2108 = vmatpush2.bf16.msra.mxu1 %v3420_v26 }
 0xc89   :  { %v1624_v34 = vpop.xlane.xlu0 %1623 }
 0xc8a   :  { %v1628_v36 = vmul.f32 0.00390625, %v1624_v34  ;;  %v1677_v34 = vrot.slane %v122_v27, %v3888_v29  ;;  %v3533_v27 = vld [vmem:[#allocation12 + $0x1d4] ss:$8 sps:$4 sm:$0xff]  }
 0xc8c   :  { %v4036_v37 = vsub.f32 %v4020_v41, %v1628_v36  ;;  %v4039_v38 = vsub.f32 %v4023_v23, %v1628_v36  ;;  %v3428_v41 = vld [vmem:[#allocation10 + $0x1c4] ss:$16 sps:$4 sm:$0xff]   ;;  %v3431_v23 = vld [vmem:[#allocation10 + $0x1cc] ss:$16 sps:$4 sm:$0xff]  }
 0xc8d   :  { %v1627_v39 = vpop.xlane.xlu1 %1626  ;;  %2109 = vmatprep.subr.bf16.mxu1 %v3428_v41  ;;  %2152 = vmatprep.subr.bf16.mxu0 %v3431_v23  ;;  %v3468_v41 = vld [vmem:[#allocation12 + $0x70] ss:$8 sps:$4 sm:$0xff]  }
 0xc8e   :  { %v1629_v40 = vmul.f32 0.00390625, %v1627_v39  ;;  %v1634_v33 = vmul.f32 %v4036_v37, %v4036_v37  ;;  %v1635_v42 = vmul.f32 %v4039_v38, %v4039_v38  ;;  %2110 = vmatpush2.bf16.msra.mxu1 %v3426_v35  ;;  %2153 = vmatpush2.bf16.msra.mxu0 %v3429_v50  ;;  %v3471_v23 = vld [vmem:[#allocation12 + $0x170] ss:$8 sps:$4 sm:$0xff]   ;;  %v3479_v35 = vld [vmem:[#allocation12 + $0x164] ss:$8 sps:$4 sm:$0xff]  }
 0xc8f   :  { %2111 = vmatprep.subr.bf16.mxu1 %v3434_v20  ;;  %2154 = vmatprep.subr.bf16.mxu0 %v3437_v49  ;;  %v3474_v50 = vld [vmem:[#allocation12 + $0x60] ss:$8 sps:$4 sm:$0xff]   ;;  %v3482_v49 = vld [vmem:[#allocation12 + $0x54] ss:$8 sps:$4 sm:$0xff]  }
 0xc90   :  { %v4046_v45 = vsub.f32 %v4028_v55, %v1629_v40  ;;  %v4049_v47 = vsub.f32 %v4031_v56, %v1629_v40  ;;  %v1638_v46 = vadd.f32 %v1635_v42, %v1634_v33  ;;  %v3432_v55 = vld [vmem:[#allocation10 + $0x1a0] ss:$16 sps:$4 sm:$0xff]   ;;  %v3435_v56 = vld [vmem:[#allocation10 + $0x1a8] ss:$16 sps:$4 sm:$0xff]  }
 0xc91   :  { %v3477_v20 = vld [vmem:[#allocation12 + $0x160] ss:$8 sps:$4 sm:$0xff]  }
 0xc92   :  { %1639 = vadd.xlane.f32.xlu0 %v1638_v46  ;;  %v1636_v48 = vmul.f32 %v4046_v45, %v4046_v45  ;;  %v1637_v54 = vmul.f32 %v4049_v47, %v4049_v47  ;;  %2112 = vmatpush2.bf16.msra.mxu1 %v3432_v55  ;;  %v3485_v55 = vld [vmem:[#allocation12 + $0x154] ss:$8 sps:$4 sm:$0xff]  }
 0xc93   :  { %2155 = vmatpush2.bf16.msra.mxu0 %v3435_v56  ;;  %2113 = vmatprep.subr.bf16.mxu1 %v3440_v43  ;;  %v3480_v56 = vld [vmem:[#allocation12 + $0x50] ss:$8 sps:$4 sm:$0xff]  }
 0xc94   :  { %v1641_v7 = vadd.f32 %v1637_v54, %v1636_v48  ;;  %2156 = vmatprep.subr.bf16.mxu0 %v3443_v58  ;;  %v3483_v43 = vld [vmem:[#allocation12 + $0x150] ss:$8 sps:$4 sm:$0xff]   ;;  %v3486_v58 = vld [vmem:[#allocation12 + $0x40] ss:$8 sps:$4 sm:$0xff]  }
 0xc96   :  { %1642 = vadd.xlane.f32.xlu1 %v1641_v7  ;;  %2114 = vmatpush2.bf16.msra.mxu1 %v3438_v57  ;;  %v3488_v57 = vld [vmem:[#allocation12 + $0x44] ss:$8 sps:$4 sm:$0xff]  }
 0xc97   :  { %2157 = vmatpush2.bf16.msra.mxu0 %v3441_v44  ;;  %2115 = vmatprep.subr.bf16.mxu1 %v3446_v59  ;;  %v3491_v44 = vld [vmem:[#allocation12 + $0x144] ss:$8 sps:$4 sm:$0xff]   ;;  %v3489_v59 = vld [vmem:[#allocation12 + $0x140] ss:$8 sps:$4 sm:$0xff]  }
 0xc98   :  { %2158 = vmatprep.subr.bf16.mxu0 %v3449_v60  ;;  %v3494_v60 = vld [vmem:[#allocation12 + $0x34] ss:$8 sps:$4 sm:$0xff]  }
 0xc9a   :  { %2116 = vmatpush2.bf16.msra.mxu1 %v3444_v61  ;;  %v3497_v61 = vld [vmem:[#allocation12 + $0x134] ss:$8 sps:$4 sm:$0xff]  }
 0xc9b   :  { %2159 = vmatpush2.bf16.msra.mxu0 %v3447_v62  ;;  %2117 = vmatprep.subr.bf16.mxu1 %v3452_v52  ;;  %v3492_v62 = vld [vmem:[#allocation12 + $0x30] ss:$8 sps:$4 sm:$0xff]  }
 0xc9c   :  { %2160 = vmatprep.subr.bf16.mxu0 %v3455_v51  ;;  %v3495_v52 = vld [vmem:[#allocation12 + $0x130] ss:$8 sps:$4 sm:$0xff]   ;;  %v3500_v51 = vld [vmem:[#allocation12 + $0x24] ss:$8 sps:$4 sm:$0xff]  }
 0xc9e   :  { %2118 = vmatpush2.bf16.msra.mxu1 %v3450_v63  ;;  %v3503_v63 = vld [vmem:[#allocation12 + $0x124] ss:$8 sps:$4 sm:$0xff]  }
 0xc9f   :  { %2161 = vmatpush2.bf16.msra.mxu0 %v3453_v0  ;;  %2119 = vmatprep.subr.bf16.mxu1 %v3458_v1  ;;  %v3498_v0 = vld [vmem:[#allocation12 + $0x20] ss:$8 sps:$4 sm:$0xff]  }
 0xca0   :  { %2162 = vmatprep.subr.bf16.mxu0 %v3461_v2  ;;  %v3501_v1 = vld [vmem:[#allocation12 + $0x120] ss:$8 sps:$4 sm:$0xff]   ;;  %v3506_v2 = vld [vmem:[#allocation12 + $0x14] ss:$8 sps:$4 sm:$0xff]  }
 0xca2   :  { %2120 = vmatpush2.bf16.msra.mxu1 %v3456_v3  ;;  %v3509_v3 = vld [vmem:[#allocation12 + $0x114] ss:$8 sps:$4 sm:$0xff]  }
 0xca3   :  { %2163 = vmatpush2.bf16.msra.mxu0 %v3459_v4  ;;  %2121 = vmatprep.subr.bf16.mxu1 %v3464_v5  ;;  %v3504_v4 = vld [vmem:[#allocation12 + $0x10] ss:$8 sps:$4 sm:$0xff]  }
 0xca4   :  { %2164 = vmatprep.subr.bf16.mxu0 %v3467_v9  ;;  %v3507_v5 = vld [vmem:[#allocation12 + $0x110] ss:$8 sps:$4 sm:$0xff]   ;;  %v3512_v9 = vld [vmem:[#allocation12 + $0x4] ss:$8 sps:$4 sm:$0xff]  }
 0xca6   :  { %2122 = vmatpush2.bf16.msra.mxu1 %v3462_v10  ;;  %v3515_v10 = vld [vmem:[#allocation12 + $0x104] ss:$8 sps:$4 sm:$0xff]  }
 0xca7   :  { %2165 = vmatpush2.bf16.msra.mxu0 %v3465_v11  ;;  %2648 = vmatprep.subr.bf16.mxu1 %v3470_v53  ;;  %v3510_v11 = vld [vmem:[#allocation12] ss:$8 sps:$4 sm:$0xff]  }
 0xca8   :  { %2691 = vmatprep.subr.bf16.mxu0 %v3473_v13  ;;  %v3513_v53 = vld [vmem:[#allocation12 + $0x100] ss:$8 sps:$4 sm:$0xff]   ;;  %v3518_v13 = vld [vmem:[#allocation12 + $0xf4] ss:$8 sps:$4 sm:$0xff]  }
 0xd1b   :  { %v1640_v14 = vpop.xlane.xlu0 %1639 }
 0xd1c   :  { %v1644_v6 = vmul.f32 0.00390625, %v1640_v14  ;;  %v3521_v14 = vld [vmem:[#allocation12 + $0x1f4] ss:$8 sps:$4 sm:$0xff]  }
 0xd1e   :  { %v1646_v15 = vadd.f32 1e-12, %v1644_v6  ;;  %v3516_v6 = vld [vmem:[#allocation12 + $0xf0] ss:$8 sps:$4 sm:$0xff]  }
 0xd1f   :  { %v1643_v16 = vpop.xlane.xlu1 %1642 }
 0xd20   :  { %3584 = vrsqrt.f32 %v1646_v15  ;;  %v1645_v17 = vmul.f32 0.00390625, %v1643_v16  ;;  %v3519_v15 = vld [vmem:[#allocation12 + $0x1f0] ss:$8 sps:$4 sm:$0xff]   ;;  %v3524_v16 = vld [vmem:[#allocation12 + $0xe4] ss:$8 sps:$4 sm:$0xff]  }
 0xd22   :  { %v1647_v18 = vadd.f32 1e-12, %v1645_v17  ;;  %v3527_v17 = vld [vmem:[#allocation12 + $0x1e4] ss:$8 sps:$4 sm:$0xff]  }
 0xd24   :  { %3586 = vrsqrt.f32 %v1647_v18  ;;  %v3522_v18 = vld [vmem:[#allocation12 + $0xe0] ss:$8 sps:$4 sm:$0xff]  }
 0xd2d   :  { %v3585_v21 = vpop.eup %3584 }
 0xd2e   :  { %v1651_v22 = vmul.f32 %v3585_v21, %v4039_v38  ;;  %v1650_v12 = vmul.f32 %v3585_v21, %v4036_v37  ;;  %v3530_v21 = vld [vmem:[#allocation12 + $0xd4] ss:$8 sps:$4 sm:$0xff]  }
 0xd30   :  { %v1666_v39 = vmul.f32 %v1662_v25, %v1651_v22  ;;  %v1665_v33 = vmul.f32 %v1658_v8, %v1650_v12  ;;  %v3528_v22 = vld [vmem:[#allocation12 + $0xd0] ss:$8 sps:$4 sm:$0xff]   ;;  %v3539_v12 = vld [vmem:[#allocation12 + $0x1c4] ss:$8 sps:$4 sm:$0xff]  }
 0xd31   :  { %v3587_v26 = vpop.eup %3586 }
 0xd32   :  { %v1653_v36 = vmul.f32 %v3587_v26, %v4049_v47  ;;  %v1652_v40 = vmul.f32 %v3587_v26, %v4046_v45  ;;  %v4063_v38 = vadd.f32 %v1677_v34, %v1666_v39  ;;  %v4067_v54 = vadd.f32 %v1673_v31, %v1665_v33  ;;  %v3476_v45 = vld [vmem:[#allocation12 + $0x64] ss:$8 sps:$4 sm:$0xff]   ;;  %v3534_v26 = vld [vmem:[#allocation12 + $0xc0] ss:$8 sps:$4 sm:$0xff]   ;;  %v3540_v39 = vld [vmem:[#allocation12 + $0xb0] ss:$8 sps:$4 sm:$0xff]  }
 0xd33   :  { %v3548_v33 = vld [vmem:[#allocation12 + $0xa4] ss:$8 sps:$4 sm:$0xff]  }
 0xd34   :  { %v1668_v42 = vmul.f32 %v1662_v25, %v1653_v36  ;;  %v1667_v46 = vmul.f32 %v1658_v8, %v1652_v40  ;;  %v3531_v8 = vld [vmem:[#allocation12 + $0x1d0] ss:$8 sps:$4 sm:$0xff]   ;;  %v3536_v25 = vld [vmem:[#allocation12 + $0xc4] ss:$8 sps:$4 sm:$0xff]   ;;  %v3545_v36 = vld [vmem:[#allocation12 + $0x1b4] ss:$8 sps:$4 sm:$0xff]  }
 0xd35   :  { %v3543_v40 = vld [vmem:[#allocation12 + $0x1b0] ss:$8 sps:$4 sm:$0xff]  }
 0xd36   :  { %v4065_v48 = vadd.f32 %v1677_v34, %v1668_v42  ;;  %v4069_v37 = vadd.f32 %v1673_v31, %v1667_v46  ;;  %v3537_v31 = vld [vmem:[#allocation12 + $0x1c0] ss:$8 sps:$4 sm:$0xff]   ;;  %v3542_v34 = vld [vmem:[#allocation12 + $0xb4] ss:$8 sps:$4 sm:$0xff]   ;;  %v3551_v42 = vld [vmem:[#allocation12 + $0x1a4] ss:$8 sps:$4 sm:$0xff]  }
 0xd37   :  { %v3546_v46 = vld [vmem:[#allocation12 + $0xa0] ss:$8 sps:$4 sm:$0xff]  }
 0xd38   :  { %v1685_v7 = vpack.c.bf16 %v4065_v48, %v4063_v38  ;;  %v1684_v47 = vpack.c.bf16 %v4069_v37, %v4067_v54 }
 0xd3a   :  { %2123 = vmatprep.mubr.bf16.mxu1 %v1685_v7  ;;  %2166 = vmatprep.mubr.bf16.mxu0 %v1685_v7  ;;  %v3549_v7 = vld [vmem:[#allocation12 + $0x1a0] ss:$8 sps:$4 sm:$0xff]  }
 0xd3b   :  { %2124 = vmatmul.mubr.bf16.vlgmr.msra.gmra.mxu1 %v1684_v47  ;;  %2167 = vmatmul.mubr.bf16.vlgmr.msra.gmra.mxu0 %v1684_v47  ;;  %v3554_v47 = vld [vmem:[#allocation12 + $0x94] ss:$8 sps:$4 sm:$0xff]  }
 0xd3c   :  { %2649 = vmatpush1.bf16.msra.mxu1 %v3468_v41  ;;  %2692 = vmatpush1.bf16.msra.mxu0 %v3471_v23  ;;  %v3557_v41 = vld [vmem:[#allocation12 + $0x194] ss:$8 sps:$4 sm:$0xff]   ;;  %v3552_v23 = vld [vmem:[#allocation12 + $0x90] ss:$8 sps:$4 sm:$0xff]  }
 0xd3d   :  { %2650 = vmatprep.subr.bf16.mxu1 %v3476_v45  ;;  %2693 = vmatprep.subr.bf16.mxu0 %v3479_v35  ;;  %v3555_v45 = vld [vmem:[#allocation12 + $0x190] ss:$8 sps:$4 sm:$0xff]   ;;  %v3558_v35 = vld [vmem:[#allocation12 + $0x80] ss:$8 sps:$4 sm:$0xff]  }
 0xd40   :  { %2651 = vmatpush1.bf16.msra.mxu1 %v3474_v50  ;;  %2694 = vmatpush1.bf16.msra.mxu0 %v3477_v20  ;;  %v3560_v50 = vld [vmem:[#allocation12 + $0x84] ss:$8 sps:$4 sm:$0xff]   ;;  %v3561_v20 = vld [vmem:[#allocation12 + $0x180] ss:$8 sps:$4 sm:$0xff]  }
 0xd41   :  { %2652 = vmatprep.subr.bf16.mxu1 %v3482_v49  ;;  %2695 = vmatprep.subr.bf16.mxu0 %v3485_v55  ;;  %v3563_v49 = vld [vmem:[#allocation12 + $0x184] ss:$8 sps:$4 sm:$0xff]   ;;  %v124_v55 = vld [vmem:[#allocation13 + $0x2] ss:$8 sm:$0xf] }
 0xd44   :  { %2653 = vmatpush1.bf16.msra.mxu1 %v3480_v56  ;;  %2696 = vmatpush1.bf16.msra.mxu0 %v3483_v43  ;;  %v1754_v56 = vrot.slane %v124_v55, %v3891_v30  ;;  %v1762_v43 = vrot.slane %v124_v55, %v307_v24 }
 0xd45   :  { %2654 = vmatprep.subr.bf16.mxu1 %v3488_v57  ;;  %2697 = vmatprep.subr.bf16.mxu0 %v3491_v44  ;;  %v1758_v57 = vrot.slane %v124_v55, %v3888_v29  ;;  %v1766_v44 = vrot.slane %v124_v55, %v311_v32 }
 0xd48   :  { %2655 = vmatpush1.bf16.msra.mxu1 %v3486_v58  ;;  %2698 = vmatpush1.bf16.msra.mxu0 %v3489_v59 }
 0xd49   :  { %2656 = vmatprep.subr.bf16.mxu1 %v3494_v60  ;;  %2699 = vmatprep.subr.bf16.mxu0 %v3497_v61 }
 0xd4c   :  { %2657 = vmatpush1.bf16.msra.mxu1 %v3492_v62  ;;  %2700 = vmatpush1.bf16.msra.mxu0 %v3495_v52 }
 0xd4d   :  { %2658 = vmatprep.subr.bf16.mxu1 %v3500_v51  ;;  %2701 = vmatprep.subr.bf16.mxu0 %v3503_v63 }
 0xd50   :  { %2659 = vmatpush1.bf16.msra.mxu1 %v3498_v0  ;;  %2702 = vmatpush1.bf16.msra.mxu0 %v3501_v1 }
 0xd51   :  { %2660 = vmatprep.subr.bf16.mxu1 %v3506_v2  ;;  %2703 = vmatprep.subr.bf16.mxu0 %v3509_v3 }
 0xd54   :  { %2661 = vmatpush1.bf16.msra.mxu1 %v3504_v4  ;;  %2704 = vmatpush1.bf16.msra.mxu0 %v3507_v5 }
 0xd55   :  { %2662 = vmatprep.subr.bf16.mxu1 %v3512_v9  ;;  %2705 = vmatprep.subr.bf16.mxu0 %v3515_v10 }
 0xd58   :  { %2663 = vmatpush1.bf16.msra.mxu1 %v3510_v11  ;;  %2706 = vmatpush1.bf16.msra.mxu0 %v3513_v53 }
 0xd59   :  { %2664 = vmatprep.subr.bf16.mxu1 %v3518_v13  ;;  %2707 = vmatprep.subr.bf16.mxu0 %v3521_v14 }
 0xd5c   :  { %2665 = vmatpush2.bf16.msra.mxu1 %v3516_v6  ;;  %2708 = vmatpush2.bf16.msra.mxu0 %v3519_v15 }
 0xd5d   :  { %2666 = vmatprep.subr.bf16.mxu1 %v3524_v16  ;;  %2709 = vmatprep.subr.bf16.mxu0 %v3527_v17 }
 0xd60   :  { %2667 = vmatpush2.bf16.msra.mxu1 %v3522_v18  ;;  %2710 = vmatpush2.bf16.msra.mxu0 %v3525_v19 }
 0xd61   :  { %2668 = vmatprep.subr.bf16.mxu1 %v3530_v21  ;;  %2711 = vmatprep.subr.bf16.mxu0 %v3533_v27 }
 0xd64   :  { %2669 = vmatpush2.bf16.msra.mxu1 %v3528_v22  ;;  %2712 = vmatpush2.bf16.msra.mxu0 %v3531_v8 }
 0xd65   :  { %2670 = vmatprep.subr.bf16.mxu1 %v3536_v25  ;;  %2713 = vmatprep.subr.bf16.mxu0 %v3539_v12 }
 0xd68   :  { %2671 = vmatpush2.bf16.msra.mxu1 %v3534_v26  ;;  %2714 = vmatpush2.bf16.msra.mxu0 %v3537_v31 }
 0xd69   :  { %2672 = vmatprep.subr.bf16.mxu1 %v3542_v34  ;;  %2715 = vmatprep.subr.bf16.mxu0 %v3545_v36 }
 0xd6c   :  { %2673 = vmatpush2.bf16.msra.mxu1 %v3540_v39  ;;  %2716 = vmatpush2.bf16.msra.mxu0 %v3543_v40 }
 0xd6d   :  { %2674 = vmatprep.subr.bf16.mxu1 %v3548_v33  ;;  %2717 = vmatprep.subr.bf16.mxu0 %v3551_v42 }
 0xd70   :  { %2675 = vmatpush2.bf16.msra.mxu1 %v3546_v46  ;;  %2718 = vmatpush2.bf16.msra.mxu0 %v3549_v7 }
 0xd71   :  { %2676 = vmatprep.subr.bf16.mxu1 %v3554_v47  ;;  %2719 = vmatprep.subr.bf16.mxu0 %v3557_v41 }
 0xd74   :  { %2677 = vmatpush2.bf16.msra.mxu1 %v3552_v23  ;;  %2720 = vmatpush2.bf16.msra.mxu0 %v3555_v45 }
 0xd75   :  { %2678 = vmatprep.subr.bf16.mxu1 %v3560_v50  ;;  %2721 = vmatprep.subr.bf16.mxu0 %v3563_v49 }
 0xd78   :  { %2679 = vmatpush2.bf16.msra.mxu1 %v3558_v35  ;;  %2722 = vmatpush2.bf16.msra.mxu0 %v3561_v20 }
 0xdfb   :  { %v2125_v58 = vpop.f32.mrf.mxu1  ;;  %v2168_v59 = vpop.f32.mrf.mxu0 }
 0xdfc   :  { %v4081_v60 = vadd.f32 %v2125_v58, %v1754_v56  ;;  %v4083_v61 = vadd.f32 %v2168_v59, %v1762_v43 }
 0xdfd   :  { %v2127_v62 = vpop.f32.mrf.mxu1  ;;  %v2170_v52 = vpop.f32.mrf.mxu0 }
 0xdfe   :  { %v2177_v51 = vmul.f32 %v4081_v60, %v4081_v60  ;;  %v2179_v63 = vmul.f32 %v4083_v61, %v4083_v61  ;;  %v4089_v24 = vadd.f32 %v2127_v62, %v1758_v57  ;;  %v4091_v0 = vadd.f32 %v2170_v52, %v1766_v44 }
 0xdff   :  { %v2129_v28 = vpop.f32.mrf.mxu1  ;;  %v2172_v32 = vpop.f32.mrf.mxu0 }
 0xe00   :  { %v2185_v1 = vmul.f32 %v2177_v51, %v4081_v60  ;;  %v2187_v2 = vmul.f32 %v2179_v63, %v4083_v61  ;;  %v2178_v3 = vmul.f32 %v4089_v24, %v4089_v24  ;;  %v2180_v4 = vmul.f32 %v4091_v0, %v4091_v0 }
 0xe01   :  { %v4099_v5 = vadd.f32 %v2129_v28, %v1754_v56  ;;  %v4101_v9 = vadd.f32 %v2172_v32, %v1762_v43  ;;  %v2131_v10 = vpop.f32.mrf.mxu1  ;;  %v2174_v11 = vpop.f32.mrf.mxu0 }
 0xe02   :  { %v2193_v53 = vmul.f32 0.044715, %v2185_v1  ;;  %v2195_v13 = vmul.f32 0.044715, %v2187_v2  ;;  %v2186_v14 = vmul.f32 %v2178_v3, %v4089_v24  ;;  %v2188_v6 = vmul.f32 %v2180_v4, %v4091_v0 }
 0xe03   :  { %v2181_v15 = vmul.f32 %v4099_v5, %v4099_v5  ;;  %v2183_v16 = vmul.f32 %v4101_v9, %v4101_v9  ;;  %v4109_v17 = vadd.f32 %v2131_v10, %v1758_v57  ;;  %v4111_v18 = vadd.f32 %v2174_v11, %v1766_v44 }
 0xe04   :  { %v2201_v19 = vadd.f32 %v2193_v53, %v4081_v60  ;;  %v2203_v21 = vadd.f32 %v2195_v13, %v4083_v61  ;;  %v2194_v27 = vmul.f32 0.044715, %v2186_v14  ;;  %v2196_v22 = vmul.f32 0.044715, %v2188_v6 }
 0xe05   :  { %v2189_v8 = vmul.f32 %v2181_v15, %v4099_v5  ;;  %v2191_v25 = vmul.f32 %v2183_v16, %v4101_v9  ;;  %v2182_v12 = vmul.f32 %v4109_v17, %v4109_v17  ;;  %v2184_v26 = vmul.f32 %v4111_v18, %v4111_v18 }
 0xe06   :  { %v2209_v31 = vmul.f32 0.7978846, %v2201_v19  ;;  %v2211_v34 = vmul.f32 0.7978846, %v2203_v21  ;;  %v2202_v36 = vadd.f32 %v2194_v27, %v4089_v24  ;;  %v2204_v39 = vadd.f32 %v2196_v22, %v4091_v0 }
 0xe07   :  { %v2197_v40 = vmul.f32 0.044715, %v2189_v8  ;;  %v2199_v33 = vmul.f32 0.044715, %v2191_v25  ;;  %v2190_v42 = vmul.f32 %v2182_v12, %v4109_v17  ;;  %v2192_v46 = vmul.f32 %v2184_v26, %v4111_v18 }
 0xe08   :  { %3588 = vtanh.f32 %v2209_v31  ;;  %v2210_v7 = vmul.f32 0.7978846, %v2202_v36  ;;  %v2212_v47 = vmul.f32 0.7978846, %v2204_v39 }
 0xe09   :  { %3590 = vtanh.f32 %v2211_v34  ;;  %v2205_v41 = vadd.f32 %v2197_v40, %v4099_v5  ;;  %v2207_v23 = vadd.f32 %v2199_v33, %v4101_v9  ;;  %v2198_v45 = vmul.f32 0.044715, %v2190_v42 }
 0xe0a   :  { %3592 = vtanh.f32 %v2210_v7  ;;  %v2200_v35 = vmul.f32 0.044715, %v2192_v46 }
 0xe0b   :  { %3594 = vtanh.f32 %v2212_v47  ;;  %v2213_v50 = vmul.f32 0.7978846, %v2205_v41  ;;  %v2215_v20 = vmul.f32 0.7978846, %v2207_v23  ;;  %v2206_v49 = vadd.f32 %v2198_v45, %v4109_v17 }
 0xe0c   :  { %v2208_v55 = vadd.f32 %v2200_v35, %v4111_v18 }
 0xe0d   :  { %3596 = vtanh.f32 %v2213_v50  ;;  %v2214_v56 = vmul.f32 0.7978846, %v2206_v49 }
 0xe0e   :  { %3598 = vtanh.f32 %v2215_v20  ;;  %v2216_v43 = vmul.f32 0.7978846, %v2208_v55 }
 0xe0f   :  { %3600 = vtanh.f32 %v2214_v56 }
 0xe10   :  { %3602 = vtanh.f32 %v2216_v43 }
 0xe15   :  { %v3589_v57 = vpop.eup %3588 }
 0xe16   :  { %v3591_v44 = vpop.eup %3590  ;;  %v2225_v51 = vadd.f32 1.0, %v3589_v57 }
 0xe17   :  { %v3593_v58 = vpop.eup %3592  ;;  %v2227_v32 = vadd.f32 1.0, %v3591_v44 }
 0xe18   :  { %v3595_v59 = vpop.eup %3594  ;;  %v2226_v62 = vadd.f32 1.0, %v3593_v58  ;;  %v2233_v13 = vmul.f32 0.5, %v2225_v51 }
 0xe19   :  { %v2228_v63 = vadd.f32 1.0, %v3595_v59  ;;  %v2235_v16 = vmul.f32 0.5, %v2227_v32 }
 0xe1a   :  { %v3597_v52 = vpop.eup %3596  ;;  %v2234_v53 = vmul.f32 0.5, %v2226_v62  ;;  %v2241_v12 = vmul.f32 %v2233_v13, %v4081_v60 }
 0xe1b   :  { %v3599_v28 = vpop.eup %3598  ;;  %v2229_v1 = vadd.f32 1.0, %v3597_v52  ;;  %v2236_v15 = vmul.f32 0.5, %v2228_v63  ;;  %v2243_v34 = vmul.f32 %v2235_v16, %v4083_v61 }
 0xe1c   :  { %v3601_v2 = vpop.eup %3600  ;;  %v2231_v3 = vadd.f32 1.0, %v3599_v28  ;;  %v2242_v8 = vmul.f32 %v2234_v53, %v4089_v24 }
 0xe1d   :  { %v3603_v4 = vpop.eup %3602  ;;  %v2237_v10 = vmul.f32 0.5, %v2229_v1  ;;  %v2230_v11 = vadd.f32 1.0, %v3601_v2  ;;  %v2244_v26 = vmul.f32 %v2236_v15, %v4091_v0  ;;  %v130_v15 = vld [vmem:[#allocation13 + $0x13] ss:$8 sm:$0x3] }
 0xe1e   :  { %v2239_v14 = vmul.f32 0.5, %v2231_v3  ;;  %v2232_v6 = vadd.f32 1.0, %v3603_v4 }
 0xe1f   :  { %v2238_v19 = vmul.f32 0.5, %v2230_v11  ;;  %v2245_v21 = vmul.f32 %v2237_v10, %v4099_v5 }
 0xe20   :  { %v2240_v27 = vmul.f32 0.5, %v2232_v6  ;;  %v2247_v22 = vmul.f32 %v2239_v14, %v4101_v9  ;;  %v126_v9 = vld [vmem:[#allocation13 + $0x22] ss:$8 sm:$0x3] }
 0xe21   :  { %v2246_v25 = vmul.f32 %v2238_v19, %v4109_v17  ;;  %v2249_v40 = vpack.c.bf16 %v2245_v21, %v2241_v12  ;;  %v2321_v24 = vrot.slane %v126_v9, %v3891_v30  ;;  %v2325_v17 = vrot.slane %v126_v9, %v3888_v29  ;;  %v128_v6 = vld [vmem:[#allocation13 + $0x3] ss:$8 sm:$0x3] }
 0xe22   :  { %v2248_v31 = vmul.f32 %v2240_v27, %v4111_v18  ;;  %v2251_v5 = vpack.c.bf16 %v2247_v22, %v2243_v34  ;;  %v2774_v16 = vrot.slane %v128_v6, %v3891_v30  ;;  %v2778_v19 = vrot.slane %v128_v6, %v3888_v29 }
 0xe23   :  { %v2250_v36 = vpack.c.bf16 %v2246_v25, %v2242_v8  ;;  %v2789_v8 = vrot.slane %v130_v15, %v3891_v30  ;;  %v2793_v25 = vrot.slane %v130_v15, %v3888_v29 }
 0xe24   :  { %v2252_v39 = vpack.c.bf16 %v2248_v31, %v2244_v26 }
 0xe25   :  { %2680 = vmatprep.mubr.bf16.mxu1 %v2250_v36 }
 0xe26   :  { %2723 = vmatprep.mubr.bf16.mxu0 %v2252_v39  ;;  %2681 = vmatmul.mubr.bf16.vlgmr.msra.gmra.mxu1 %v2249_v40 }
 0xe27   :  { %2724 = vmatmul.mubr.bf16.vlgmr.msra.gmra.mxu0 %v2251_v5 }
 0xee6   :  { %v2682_v60 = vpop.f32.mrf.mxu1 }
 0xee7   :  { %v2683_v33 = vadd.f32 %v2682_v60, %v2321_v24  ;;  %v2725_v0 = vpop.f32.mrf.mxu0 }
 0xee8   :  { %v2684_v42 = vpop.f32.mrf.mxu1 }
 0xee9   :  { %v2726_v18 = vadd.f32 %v2725_v0, %v2683_v33  ;;  %v2685_v46 = vadd.f32 %v2684_v42, %v2325_v17  ;;  %v2727_v61 = vpop.f32.mrf.mxu0 }
 0xeea   :  { %v2686_v7 = vpop.f32.mrf.mxu1 }
 0xeeb   :  { %v2728_v47 = vadd.f32 %v2727_v61, %v2685_v46  ;;  %v2687_v41 = vadd.f32 %v2686_v7, %v2321_v24  ;;  %v2729_v23 = vpop.f32.mrf.mxu0  ;;  %v2734_v35 = vadd.f32 %v2726_v18, %v4067_v54 }
 0xeec   :  { %v2688_v45 = vpop.f32.mrf.mxu1 }
 0xeed   :  { %v2735_v50 = vadd.f32 %v2728_v47, %v4063_v38  ;;  %v2730_v20 = vadd.f32 %v2729_v23, %v2687_v41  ;;  %v2689_v49 = vadd.f32 %v2688_v45, %v2325_v17  ;;  %v2731_v55 = vpop.f32.mrf.mxu0 }
 0xeef   :  { %v2732_v56 = vadd.f32 %v2731_v55, %v2689_v49  ;;  %v2738_v43 = vadd.f32 %v2735_v50, %v2734_v35  ;;  %v2736_v57 = vadd.f32 %v2730_v20, %v4069_v37 }
 0xef1   :  { %v2737_v44 = vadd.f32 %v2732_v56, %v4065_v48  ;;  %2739 = vadd.xlane.f32.xlu0 %v2738_v43 }
 0xef3   :  { %v2741_v58 = vadd.f32 %v2737_v44, %v2736_v57 }
 0xef5   :  { %2742 = vadd.xlane.f32.xlu1 %v2741_v58 }
 0xf7a   :  { %v2740_v59 = vpop.xlane.xlu0 %2739 }
 0xf7b   :  { %v2744_v62 = vmul.f32 0.00390625, %v2740_v59 }
 0xf7d   :  { %v2746_v52 = vsub.f32 %v2734_v35, %v2744_v62  ;;  %v2747_v51 = vsub.f32 %v2735_v50, %v2744_v62 }
 0xf7e   :  { %v2743_v63 = vpop.xlane.xlu1 %2742 }
 0xf7f   :  { %v2745_v54 = vmul.f32 0.00390625, %v2743_v63  ;;  %v2750_v28 = vmul.f32 %v2746_v52, %v2746_v52  ;;  %v2751_v38 = vmul.f32 %v2747_v51, %v2747_v51 }
 0xf81   :  { %v2748_v32 = vsub.f32 %v2736_v57, %v2745_v54  ;;  %v2749_v1 = vsub.f32 %v2737_v44, %v2745_v54  ;;  %v2754_v2 = vadd.f32 %v2751_v38, %v2750_v28 }
 0xf83   :  { %2755 = vadd.xlane.f32.xlu0 %v2754_v2  ;;  %v2752_v3 = vmul.f32 %v2748_v32, %v2748_v32  ;;  %v2753_v4 = vmul.f32 %v2749_v1, %v2749_v1 }
 0xf85   :  { %v2757_v37 = vadd.f32 %v2753_v4, %v2752_v3 }
 0xf87   :  { %2758 = vadd.xlane.f32.xlu1 %v2757_v37 }
0x100c   :  { %v2756_v48 = vpop.xlane.xlu0 %2755 }
0x100d   :  { %v2760_v10 = vmul.f32 0.00390625, %v2756_v48 }
0x100f   :  { %v2762_v11 = vadd.f32 1e-12, %v2760_v10 }
0x1010   :  { %v2759_v53 = vpop.xlane.xlu1 %2758 }
0x1011   :  { %3604 = vrsqrt.f32 %v2762_v11  ;;  %v2761_v13 = vmul.f32 0.00390625, %v2759_v53 }
0x1013   :  { %v2763_v14 = vadd.f32 1e-12, %v2761_v13 }
0x1015   :  { %3606 = vrsqrt.f32 %v2763_v14 }
0x101e   :  { %v3605_v21 = vpop.eup %3604 }
0x101f   :  { %v2766_v27 = vmul.f32 %v3605_v21, %v2746_v52  ;;  %v2767_v22 = vmul.f32 %v3605_v21, %v2747_v51 }
0x1021   :  { %v2781_v12 = vmul.f32 %v2774_v16, %v2766_v27  ;;  %v2782_v26 = vmul.f32 %v2778_v19, %v2767_v22 }
0x1022   :  { %v3607_v31 = vpop.eup %3606 }
0x1023   :  { %v2768_v34 = vmul.f32 %v3607_v31, %v2748_v32  ;;  %v2769_v36 = vmul.f32 %v3607_v31, %v2749_v1  ;;  %v2796_v39 = vadd.f32 %v2789_v8, %v2781_v12  ;;  %v2797_v40 = vadd.f32 %v2793_v25, %v2782_v26 }
0x1025   :  { %v2783_v5 = vmul.f32 %v2774_v16, %v2768_v34  ;;  %v2784_v9 = vmul.f32 %v2778_v19, %v2769_v36  ;;  %v3097_v24 = vpack.c.bf16 %v2797_v40, %v2796_v39 }
0x1027   :  { %v2798_v17 = vadd.f32 %v2789_v8, %v2783_v5  ;;  %v2799_v60 = vadd.f32 %v2793_v25, %v2784_v9  ;;  %2812 = vst [vmem:[#allocation15] sm:$0xff] %v3097_v24 }
0x1029   :  { %v3098_v33 = vpack.c.bf16 %v2799_v60, %v2798_v17 }
0x102b   :  { %2813 = vst [vmem:[#allocation15 + $0x8] sm:$0xff] %v3098_v33 }
0x102c   :  { %3747 = shalt.err (!%p3744_p6)
}
0x102d   :  { %2825 = dma.vmem_to_hbm [thread:$0]  %s2820_s12, 256, %s4160_s7, [#allocation6], %s3777_s4, %s3777_s4, %s3778_s24  }
0x102e   :  { %3766 = dma.done.wait [#allocation6], 256  }
0x102f   :  { %3767 = vsyncadd [#allocation6], 4294967040 }
0x1030   :  { %2829 = vsyncpa [#allocation5], 1 }
0x1031   :  { %2830 = vsyncpa [#allocation8], 1 }
0x1032   :  { %2831 = vsyncpa [#allocation11], 1 }
0x1033   :  { %2832 = vsyncpa [#allocation14], 1 }
0x1034   :  { %2833 = vsyncpa [#allocation6], 1 }

</bundles_post_ra>
